<compile_context>
chip_gen: v7x
topology: tpu7x:2x2x1
jax: 0.10.0
libtpu: 0.0.40
codegen_flags: <defaults>
</compile_context>

<pallas_src>
import functools

import jax
import jax.numpy as jnp
from jax.experimental import pallas as pl
from jax.experimental.pallas import tpu as pltpu


# ------------------------------ fused LRCN kernel ------------------------------

def _make_lrcn_kernel(num_layers, seq_len, batch, hidden):
    L, T, B, H = num_layers, seq_len, batch, hidden

    def kernel(*refs):
        x_ref = refs[0]                              # (T*B, D0), time-major rows
        w_refs = refs[1:1 + 3 * L]                   # per layer: w_ih_t, w_hh_t, bias
        y_ref = refs[1 + 3 * L]                      # (T*B, H), time-major rows
        h_ref = refs[2 + 3 * L]                      # (L, B, H) final hidden state
        c_ref = refs[3 + 3 * L]                      # (L, B, H) final cell state

        # Load weights once (VMEM-resident values).
        w_ih = [w_refs[3 * l + 0][...] for l in range(L)]   # (D_l, 4H)
        w_hh = [w_refs[3 * l + 1][...] for l in range(L)]   # (H, 4H)
        bias = [w_refs[3 * l + 2][...] for l in range(L)]   # (1, 4H)

        # Hoisted layer-0 input projection (+ bias) for ALL timesteps: one matmul.
        gx0 = jnp.dot(x_ref[...], w_ih[0],
                      preferred_element_type=jnp.float32) + bias[0]   # (T*B, 4H)

        def cell_step(gates, c_prev):
            # One EUP push over the full (B, 4H) vreg; slice i/f/o post-activation.
            sig = jax.nn.sigmoid(gates)
            i = sig[:, 0 * H:1 * H]
            f = sig[:, 1 * H:2 * H]
            o = sig[:, 3 * H:4 * H]
            g = jnp.tanh(gates[:, 2 * H:3 * H])
            c = f * c_prev + i * g
            h = o * jnp.tanh(c)
            return h, c

        zeros = jnp.zeros((B, H), jnp.float32)
        h_state = [zeros for _ in range(L)]
        c_state = [zeros for _ in range(L)]
        nxt_in = [[None] * T for _ in range(L)]      # layer-(l) input values, l >= 1
        y_rows = [None] * T                          # last layer's h_t values

        # Wavefront over (layer, time): items at the same wavefront step s are
        # mutually independent -> the scheduler interleaves L dependency chains,
        # and inter-layer handoff is pure values (no scratch-ref serialization).
        for s in range(T + L - 1):
            for l in range(L):
                t = s - l
                if t < 0 or t >= T:
                    continue
                if l == 0:
                    gx = gx0[t * B:(t + 1) * B, :]                       # (B, 4H)
                else:
                    gx = jnp.dot(nxt_in[l][t], w_ih[l],
                                 preferred_element_type=jnp.float32) + bias[l]
                gates = gx + jnp.dot(h_state[l], w_hh[l],
                                     preferred_element_type=jnp.float32)
                h, c = cell_step(gates, c_state[l])
                h_state[l] = h
                c_state[l] = c
                if l + 1 < L:
                    nxt_in[l + 1][t] = h
                else:
                    y_rows[t] = h

        # Consolidated stores: ONE store for the whole (T*B, H) output instead of
        # T masked per-timestep stores, plus L tiny static stores for h_n / c_n.
        y_ref[...] = jnp.concatenate(y_rows, axis=0)                     # (T*B, H)
        for l in range(L):
            h_ref[l] = h_state[l]
            c_ref[l] = c_state[l]

    return kernel


def lrcn_forward(X, params, seq_len):
    """X: (B, ...) with prod(...) == seq_len * input_size.

    Returns (lstm_outputs (B,T,H), (h_n (L,B,H), c_n (L,B,H))).
    """
    layers = params["lstm"]
    L = len(layers)
    H = layers[0]["w_hh_t"].shape[0]
    B = X.shape[0]
    T = seq_len

    # X.view(B, seq_len, -1), then pre-flatten to time-major 2D for the kernel
    # so every in-kernel operand stays 2D with the gate/hidden dim on lanes.
    x = X.reshape(B, T, -1).astype(jnp.float32)
    x_tm = x.swapaxes(0, 1).reshape(T * B, -1)           # (T*B, D)

    flat_weights = []
    for lyr in layers:
        flat_weights += [lyr["w_ih_t"], lyr["w_hh_t"], lyr["bias"]]
    n_in = 1 + 3 * L

    y2d, h_n, c_n = pl.pallas_call(
        _make_lrcn_kernel(L, T, B, H),
        out_shape=(jax.ShapeDtypeStruct((T * B, H), jnp.float32),
                   jax.ShapeDtypeStruct((L, B, H), jnp.float32),
                   jax.ShapeDtypeStruct((L, B, H), jnp.float32)),
        in_specs=[pl.BlockSpec(memory_space=pltpu.MemorySpace.VMEM)] * n_in,
        out_specs=(pl.BlockSpec(memory_space=pltpu.MemorySpace.VMEM),) * 3,
    )(x_tm, *flat_weights)

    y = y2d.reshape(T, B, H).swapaxes(0, 1)              # (B, T, H)
    return y, (h_n, c_n)


# --------------------------- pure-JAX reference (check) ------------------------

def reference_forward(X, params, seq_len):
    B = X.shape[0]
    x = X.reshape(B, seq_len, -1).astype(jnp.float32)
    hs, cs = [], []
    for lyr in params["lstm"]:
        H = lyr["w_hh_t"].shape[0]
        h = jnp.zeros((B, H), jnp.float32)
        c = jnp.zeros((B, H), jnp.float32)
        outs = []
        for t in range(seq_len):
            gates = x[:, t, :] @ lyr["w_ih_t"] + h @ lyr["w_hh_t"] + lyr["bias"]
            i = jax.nn.sigmoid(gates[:, 0 * H:1 * H])
            f = jax.nn.sigmoid(gates[:, 1 * H:2 * H])
            g = jnp.tanh(gates[:, 2 * H:3 * H])
            o = jax.nn.sigmoid(gates[:, 3 * H:4 * H])
            c = f * c + i * g
            h = o * jnp.tanh(c)
            outs.append(h)
        x = jnp.stack(outs, axis=1)
        hs.append(h)
        cs.append(c)
    return x, (jnp.stack(hs, axis=0), jnp.stack(cs, axis=0))


# ----------------------------------- params -------------------------------------

def init_params(key, input_size, num_hiddens, num_layers):
    ks = iter(jax.random.split(key, 4 * num_layers))
    lstm = []
    d_in = input_size
    for _ in range(num_layers):
        w_ih = 0.1 * jax.random.normal(next(ks), (4 * num_hiddens, d_in), jnp.float32)
        w_hh = 0.1 * jax.random.normal(next(ks), (4 * num_hiddens, num_hiddens),
                                       jnp.float32)
        b_ih = 0.1 * jax.random.normal(next(ks), (4 * num_hiddens,), jnp.float32)
        b_hh = 0.1 * jax.random.normal(next(ks), (4 * num_hiddens,), jnp.float32)
        lstm.append({
            "w_ih_t": w_ih.T,                                   # (D, 4H), i|f|g|o
            "w_hh_t": w_hh.T,                                   # (H, 4H)
            "bias": (b_ih + b_hh).reshape(1, 4 * num_hiddens),  # (1, 4H)
        })
        d_in = num_hiddens
    return {"lstm": lstm}


# ------------------------------------ main ---------------------------------------

if __name__ == "__main__":
    # B=8 fills all 8 f32 sublanes of the recurrent matmul and keeps the
    # time-major slices / concat exactly tile-aligned.
    INPUT_SIZE, SEQ_LEN, NUM_HIDDENS, NUM_LAYERS, BATCH = 16, 8, 32, 2, 8

    key = jax.random.PRNGKey(0)
    k_x, k_p = jax.random.split(key)
    X = jax.random.normal(k_x, (BATCH, SEQ_LEN, INPUT_SIZE), jnp.float32)
    params = init_params(k_p, INPUT_SIZE, NUM_HIDDENS, NUM_LAYERS)

    fwd = jax.jit(functools.partial(lrcn_forward, seq_len=SEQ_LEN))
    Y, (h_n, c_n) = fwd(X, params)
    jax.block_until_ready((Y, h_n, c_n))

    Y_ref, (h_ref, c_ref) = reference_forward(X, params, SEQ_LEN)
    assert Y.shape == (BATCH, SEQ_LEN, NUM_HIDDENS)
    assert h_n.shape == (NUM_LAYERS, BATCH, NUM_HIDDENS)
    assert c_n.shape == (NUM_LAYERS, BATCH, NUM_HIDDENS)
    assert jnp.allclose(Y, Y_ref, atol=1e-4, rtol=1e-4)
    assert jnp.allclose(h_n, h_ref, atol=1e-4, rtol=1e-4)
    assert jnp.allclose(c_n, c_ref, atol=1e-4, rtol=1e-4)

    print("KERNEL_OK")
</pallas_src>

<mosaic_0001>
module attributes {stable_mosaic.version = 11 : i64} {
  func.func @kernel(%arg0: memref<64x16xf32, #tpu.memory_space<vmem>>, %arg1: memref<16x128xf32, #tpu.memory_space<vmem>>, %arg2: memref<32x128xf32, #tpu.memory_space<vmem>>, %arg3: memref<1x128xf32, #tpu.memory_space<vmem>>, %arg4: memref<32x128xf32, #tpu.memory_space<vmem>>, %arg5: memref<32x128xf32, #tpu.memory_space<vmem>>, %arg6: memref<1x128xf32, #tpu.memory_space<vmem>>, %arg7: memref<64x32xf32, #tpu.memory_space<vmem>>, %arg8: memref<2x8x32xf32, #tpu.memory_space<vmem>>, %arg9: memref<2x8x32xf32, #tpu.memory_space<vmem>>) attributes {dimension_semantics = [], scalar_prefetch = 0 : i64, scratch_operands = 0 : i64, tpu.core_type = #tpu.core_type<tc>} {
    %c0 = arith.constant 0 : index
    %c0_0 = arith.constant 0 : index
    %0 = vector.load %arg1[%c0, %c0_0] : memref<16x128xf32, #tpu.memory_space<vmem>>, vector<16x128xf32>
    %c0_1 = arith.constant 0 : index
    %c0_2 = arith.constant 0 : index
    %1 = vector.load %arg4[%c0_1, %c0_2] : memref<32x128xf32, #tpu.memory_space<vmem>>, vector<32x128xf32>
    %c0_3 = arith.constant 0 : index
    %c0_4 = arith.constant 0 : index
    %2 = vector.load %arg2[%c0_3, %c0_4] : memref<32x128xf32, #tpu.memory_space<vmem>>, vector<32x128xf32>
    %c0_5 = arith.constant 0 : index
    %c0_6 = arith.constant 0 : index
    %3 = vector.load %arg5[%c0_5, %c0_6] : memref<32x128xf32, #tpu.memory_space<vmem>>, vector<32x128xf32>
    %c0_7 = arith.constant 0 : index
    %c0_8 = arith.constant 0 : index
    %4 = vector.load %arg3[%c0_7, %c0_8] : memref<1x128xf32, #tpu.memory_space<vmem>>, vector<1x128xf32>
    %c0_9 = arith.constant 0 : index
    %c0_10 = arith.constant 0 : index
    %5 = vector.load %arg6[%c0_9, %c0_10] : memref<1x128xf32, #tpu.memory_space<vmem>>, vector<1x128xf32>
    %c0_11 = arith.constant 0 : index
    %c0_12 = arith.constant 0 : index
    %6 = vector.load %arg0[%c0_11, %c0_12] : memref<64x16xf32, #tpu.memory_space<vmem>>, vector<64x16xf32>
    %cst = arith.constant dense<0.000000e+00> : vector<64x128xf32>
    %7 = tpu.matmul %6, %0, %cst {dimension_numbers = #tpu.dot_dimension_numbers<[1], [0], [0], [1], [0, 0, 1, 1], [], []>} : vector<64x16xf32>, vector<16x128xf32>, vector<64x128xf32> -> vector<64x128xf32>
    %8 = vector.broadcast %4 : vector<1x128xf32> to vector<64x128xf32>
    %9 = arith.addf %7, %8 : vector<64x128xf32>
    %cst_13 = arith.constant 0.000000e+00 : f32
    %10 = vector.broadcast %cst_13 : f32 to vector<8x32xf32>
    %11 = vector.extract_strided_slice %9 {offsets = [0, 0], sizes = [8, 128], strides = [1, 1]} : vector<64x128xf32> to vector<8x128xf32>
    %cst_14 = arith.constant dense<0.000000e+00> : vector<8x128xf32>
    %12 = tpu.matmul %10, %2, %cst_14 {dimension_numbers = #tpu.dot_dimension_numbers<[1], [0], [0], [1], [0, 0, 1, 1], [], []>} : vector<8x32xf32>, vector<32x128xf32>, vector<8x128xf32> -> vector<8x128xf32>
    %13 = arith.addf %11, %12 : vector<8x128xf32>
    %14 = arith.negf %13 : vector<8x128xf32>
    %15 = math.exp %14 : vector<8x128xf32>
    %cst_15 = arith.constant 1.000000e+00 : f32
    %16 = vector.broadcast %cst_15 : f32 to vector<8x128xf32>
    %17 = arith.addf %16, %15 : vector<8x128xf32>
    %18 = arith.divf %16, %17 : vector<8x128xf32>
    %19 = vector.extract_strided_slice %18 {offsets = [0, 0], sizes = [8, 32], strides = [1, 1]} : vector<8x128xf32> to vector<8x32xf32>
    %20 = vector.extract_strided_slice %18 {offsets = [0, 32], sizes = [8, 32], strides = [1, 1]} : vector<8x128xf32> to vector<8x32xf32>
    %21 = vector.extract_strided_slice %18 {offsets = [0, 96], sizes = [8, 32], strides = [1, 1]} : vector<8x128xf32> to vector<8x32xf32>
    %22 = vector.extract_strided_slice %13 {offsets = [0, 64], sizes = [8, 32], strides = [1, 1]} : vector<8x128xf32> to vector<8x32xf32>
    %23 = math.tanh %22 : vector<8x32xf32>
    %24 = arith.mulf %20, %10 : vector<8x32xf32>
    %25 = arith.mulf %19, %23 : vector<8x32xf32>
    %26 = arith.addf %24, %25 : vector<8x32xf32>
    %27 = math.tanh %26 : vector<8x32xf32>
    %28 = arith.mulf %21, %27 : vector<8x32xf32>
    %29 = vector.extract_strided_slice %9 {offsets = [8, 0], sizes = [8, 128], strides = [1, 1]} : vector<64x128xf32> to vector<8x128xf32>
    %cst_16 = arith.constant dense<0.000000e+00> : vector<8x128xf32>
    %30 = tpu.matmul %28, %2, %cst_16 {dimension_numbers = #tpu.dot_dimension_numbers<[1], [0], [0], [1], [0, 0, 1, 1], [], []>} : vector<8x32xf32>, vector<32x128xf32>, vector<8x128xf32> -> vector<8x128xf32>
    %31 = arith.addf %29, %30 : vector<8x128xf32>
    %32 = arith.negf %31 : vector<8x128xf32>
    %33 = math.exp %32 : vector<8x128xf32>
    %cst_17 = arith.constant 1.000000e+00 : f32
    %34 = vector.broadcast %cst_17 : f32 to vector<8x128xf32>
    %35 = arith.addf %34, %33 : vector<8x128xf32>
    %36 = arith.divf %34, %35 : vector<8x128xf32>
    %37 = vector.extract_strided_slice %36 {offsets = [0, 0], sizes = [8, 32], strides = [1, 1]} : vector<8x128xf32> to vector<8x32xf32>
    %38 = vector.extract_strided_slice %36 {offsets = [0, 32], sizes = [8, 32], strides = [1, 1]} : vector<8x128xf32> to vector<8x32xf32>
    %39 = vector.extract_strided_slice %36 {offsets = [0, 96], sizes = [8, 32], strides = [1, 1]} : vector<8x128xf32> to vector<8x32xf32>
    %40 = vector.extract_strided_slice %31 {offsets = [0, 64], sizes = [8, 32], strides = [1, 1]} : vector<8x128xf32> to vector<8x32xf32>
    %41 = math.tanh %40 : vector<8x32xf32>
    %42 = arith.mulf %38, %26 : vector<8x32xf32>
    %43 = arith.mulf %37, %41 : vector<8x32xf32>
    %44 = arith.addf %42, %43 : vector<8x32xf32>
    %45 = math.tanh %44 : vector<8x32xf32>
    %46 = arith.mulf %39, %45 : vector<8x32xf32>
    %cst_18 = arith.constant dense<0.000000e+00> : vector<8x128xf32>
    %47 = tpu.matmul %28, %1, %cst_18 {dimension_numbers = #tpu.dot_dimension_numbers<[1], [0], [0], [1], [0, 0, 1, 1], [], []>} : vector<8x32xf32>, vector<32x128xf32>, vector<8x128xf32> -> vector<8x128xf32>
    %48 = vector.broadcast %5 : vector<1x128xf32> to vector<8x128xf32>
    %49 = arith.addf %47, %48 : vector<8x128xf32>
    %cst_19 = arith.constant dense<0.000000e+00> : vector<8x128xf32>
    %50 = tpu.matmul %10, %3, %cst_19 {dimension_numbers = #tpu.dot_dimension_numbers<[1], [0], [0], [1], [0, 0, 1, 1], [], []>} : vector<8x32xf32>, vector<32x128xf32>, vector<8x128xf32> -> vector<8x128xf32>
    %51 = arith.addf %49, %50 : vector<8x128xf32>
    %52 = arith.negf %51 : vector<8x128xf32>
    %53 = math.exp %52 : vector<8x128xf32>
    %cst_20 = arith.constant 1.000000e+00 : f32
    %54 = vector.broadcast %cst_20 : f32 to vector<8x128xf32>
    %55 = arith.addf %54, %53 : vector<8x128xf32>
    %56 = arith.divf %54, %55 : vector<8x128xf32>
    %57 = vector.extract_strided_slice %56 {offsets = [0, 0], sizes = [8, 32], strides = [1, 1]} : vector<8x128xf32> to vector<8x32xf32>
    %58 = vector.extract_strided_slice %56 {offsets = [0, 32], sizes = [8, 32], strides = [1, 1]} : vector<8x128xf32> to vector<8x32xf32>
    %59 = vector.extract_strided_slice %56 {offsets = [0, 96], sizes = [8, 32], strides = [1, 1]} : vector<8x128xf32> to vector<8x32xf32>
    %60 = vector.extract_strided_slice %51 {offsets = [0, 64], sizes = [8, 32], strides = [1, 1]} : vector<8x128xf32> to vector<8x32xf32>
    %61 = math.tanh %60 : vector<8x32xf32>
    %62 = arith.mulf %58, %10 : vector<8x32xf32>
    %63 = arith.mulf %57, %61 : vector<8x32xf32>
    %64 = arith.addf %62, %63 : vector<8x32xf32>
    %65 = math.tanh %64 : vector<8x32xf32>
    %66 = arith.mulf %59, %65 : vector<8x32xf32>
    %67 = vector.extract_strided_slice %9 {offsets = [16, 0], sizes = [8, 128], strides = [1, 1]} : vector<64x128xf32> to vector<8x128xf32>
    %cst_21 = arith.constant dense<0.000000e+00> : vector<8x128xf32>
    %68 = tpu.matmul %46, %2, %cst_21 {dimension_numbers = #tpu.dot_dimension_numbers<[1], [0], [0], [1], [0, 0, 1, 1], [], []>} : vector<8x32xf32>, vector<32x128xf32>, vector<8x128xf32> -> vector<8x128xf32>
    %69 = arith.addf %67, %68 : vector<8x128xf32>
    %70 = arith.negf %69 : vector<8x128xf32>
    %71 = math.exp %70 : vector<8x128xf32>
    %cst_22 = arith.constant 1.000000e+00 : f32
    %72 = vector.broadcast %cst_22 : f32 to vector<8x128xf32>
    %73 = arith.addf %72, %71 : vector<8x128xf32>
    %74 = arith.divf %72, %73 : vector<8x128xf32>
    %75 = vector.extract_strided_slice %74 {offsets = [0, 0], sizes = [8, 32], strides = [1, 1]} : vector<8x128xf32> to vector<8x32xf32>
    %76 = vector.extract_strided_slice %74 {offsets = [0, 32], sizes = [8, 32], strides = [1, 1]} : vector<8x128xf32> to vector<8x32xf32>
    %77 = vector.extract_strided_slice %74 {offsets = [0, 96], sizes = [8, 32], strides = [1, 1]} : vector<8x128xf32> to vector<8x32xf32>
    %78 = vector.extract_strided_slice %69 {offsets = [0, 64], sizes = [8, 32], strides = [1, 1]} : vector<8x128xf32> to vector<8x32xf32>
    %79 = math.tanh %78 : vector<8x32xf32>
    %80 = arith.mulf %76, %44 : vector<8x32xf32>
    %81 = arith.mulf %75, %79 : vector<8x32xf32>
    %82 = arith.addf %80, %81 : vector<8x32xf32>
    %83 = math.tanh %82 : vector<8x32xf32>
    %84 = arith.mulf %77, %83 : vector<8x32xf32>
    %cst_23 = arith.constant dense<0.000000e+00> : vector<8x128xf32>
    %85 = tpu.matmul %46, %1, %cst_23 {dimension_numbers = #tpu.dot_dimension_numbers<[1], [0], [0], [1], [0, 0, 1, 1], [], []>} : vector<8x32xf32>, vector<32x128xf32>, vector<8x128xf32> -> vector<8x128xf32>
    %86 = vector.broadcast %5 : vector<1x128xf32> to vector<8x128xf32>
    %87 = arith.addf %85, %86 : vector<8x128xf32>
    %cst_24 = arith.constant dense<0.000000e+00> : vector<8x128xf32>
    %88 = tpu.matmul %66, %3, %cst_24 {dimension_numbers = #tpu.dot_dimension_numbers<[1], [0], [0], [1], [0, 0, 1, 1], [], []>} : vector<8x32xf32>, vector<32x128xf32>, vector<8x128xf32> -> vector<8x128xf32>
    %89 = arith.addf %87, %88 : vector<8x128xf32>
    %90 = arith.negf %89 : vector<8x128xf32>
    %91 = math.exp %90 : vector<8x128xf32>
    %cst_25 = arith.constant 1.000000e+00 : f32
    %92 = vector.broadcast %cst_25 : f32 to vector<8x128xf32>
    %93 = arith.addf %92, %91 : vector<8x128xf32>
    %94 = arith.divf %92, %93 : vector<8x128xf32>
    %95 = vector.extract_strided_slice %94 {offsets = [0, 0], sizes = [8, 32], strides = [1, 1]} : vector<8x128xf32> to vector<8x32xf32>
    %96 = vector.extract_strided_slice %94 {offsets = [0, 32], sizes = [8, 32], strides = [1, 1]} : vector<8x128xf32> to vector<8x32xf32>
    %97 = vector.extract_strided_slice %94 {offsets = [0, 96], sizes = [8, 32], strides = [1, 1]} : vector<8x128xf32> to vector<8x32xf32>
    %98 = vector.extract_strided_slice %89 {offsets = [0, 64], sizes = [8, 32], strides = [1, 1]} : vector<8x128xf32> to vector<8x32xf32>
    %99 = math.tanh %98 : vector<8x32xf32>
    %100 = arith.mulf %96, %64 : vector<8x32xf32>
    %101 = arith.mulf %95, %99 : vector<8x32xf32>
    %102 = arith.addf %100, %101 : vector<8x32xf32>
    %103 = math.tanh %102 : vector<8x32xf32>
    %104 = arith.mulf %97, %103 : vector<8x32xf32>
    %105 = vector.extract_strided_slice %9 {offsets = [24, 0], sizes = [8, 128], strides = [1, 1]} : vector<64x128xf32> to vector<8x128xf32>
    %cst_26 = arith.constant dense<0.000000e+00> : vector<8x128xf32>
    %106 = tpu.matmul %84, %2, %cst_26 {dimension_numbers = #tpu.dot_dimension_numbers<[1], [0], [0], [1], [0, 0, 1, 1], [], []>} : vector<8x32xf32>, vector<32x128xf32>, vector<8x128xf32> -> vector<8x128xf32>
    %107 = arith.addf %105, %106 : vector<8x128xf32>
    %108 = arith.negf %107 : vector<8x128xf32>
    %109 = math.exp %108 : vector<8x128xf32>
    %cst_27 = arith.constant 1.000000e+00 : f32
    %110 = vector.broadcast %cst_27 : f32 to vector<8x128xf32>
    %111 = arith.addf %110, %109 : vector<8x128xf32>
    %112 = arith.divf %110, %111 : vector<8x128xf32>
    %113 = vector.extract_strided_slice %112 {offsets = [0, 0], sizes = [8, 32], strides = [1, 1]} : vector<8x128xf32> to vector<8x32xf32>
    %114 = vector.extract_strided_slice %112 {offsets = [0, 32], sizes = [8, 32], strides = [1, 1]} : vector<8x128xf32> to vector<8x32xf32>
    %115 = vector.extract_strided_slice %112 {offsets = [0, 96], sizes = [8, 32], strides = [1, 1]} : vector<8x128xf32> to vector<8x32xf32>
    %116 = vector.extract_strided_slice %107 {offsets = [0, 64], sizes = [8, 32], strides = [1, 1]} : vector<8x128xf32> to vector<8x32xf32>
    %117 = math.tanh %116 : vector<8x32xf32>
    %118 = arith.mulf %114, %82 : vector<8x32xf32>
    %119 = arith.mulf %113, %117 : vector<8x32xf32>
    %120 = arith.addf %118, %119 : vector<8x32xf32>
    %121 = math.tanh %120 : vector<8x32xf32>
    %122 = arith.mulf %115, %121 : vector<8x32xf32>
    %cst_28 = arith.constant dense<0.000000e+00> : vector<8x128xf32>
    %123 = tpu.matmul %84, %1, %cst_28 {dimension_numbers = #tpu.dot_dimension_numbers<[1], [0], [0], [1], [0, 0, 1, 1], [], []>} : vector<8x32xf32>, vector<32x128xf32>, vector<8x128xf32> -> vector<8x128xf32>
    %124 = vector.broadcast %5 : vector<1x128xf32> to vector<8x128xf32>
    %125 = arith.addf %123, %124 : vector<8x128xf32>
    %cst_29 = arith.constant dense<0.000000e+00> : vector<8x128xf32>
    %126 = tpu.matmul %104, %3, %cst_29 {dimension_numbers = #tpu.dot_dimension_numbers<[1], [0], [0], [1], [0, 0, 1, 1], [], []>} : vector<8x32xf32>, vector<32x128xf32>, vector<8x128xf32> -> vector<8x128xf32>
    %127 = arith.addf %125, %126 : vector<8x128xf32>
    %128 = arith.negf %127 : vector<8x128xf32>
    %129 = math.exp %128 : vector<8x128xf32>
    %cst_30 = arith.constant 1.000000e+00 : f32
    %130 = vector.broadcast %cst_30 : f32 to vector<8x128xf32>
    %131 = arith.addf %130, %129 : vector<8x128xf32>
    %132 = arith.divf %130, %131 : vector<8x128xf32>
    %133 = vector.extract_strided_slice %132 {offsets = [0, 0], sizes = [8, 32], strides = [1, 1]} : vector<8x128xf32> to vector<8x32xf32>
    %134 = vector.extract_strided_slice %132 {offsets = [0, 32], sizes = [8, 32], strides = [1, 1]} : vector<8x128xf32> to vector<8x32xf32>
    %135 = vector.extract_strided_slice %132 {offsets = [0, 96], sizes = [8, 32], strides = [1, 1]} : vector<8x128xf32> to vector<8x32xf32>
    %136 = vector.extract_strided_slice %127 {offsets = [0, 64], sizes = [8, 32], strides = [1, 1]} : vector<8x128xf32> to vector<8x32xf32>
    %137 = math.tanh %136 : vector<8x32xf32>
    %138 = arith.mulf %134, %102 : vector<8x32xf32>
    %139 = arith.mulf %133, %137 : vector<8x32xf32>
    %140 = arith.addf %138, %139 : vector<8x32xf32>
    %141 = math.tanh %140 : vector<8x32xf32>
    %142 = arith.mulf %135, %141 : vector<8x32xf32>
    %143 = vector.extract_strided_slice %9 {offsets = [32, 0], sizes = [8, 128], strides = [1, 1]} : vector<64x128xf32> to vector<8x128xf32>
    %cst_31 = arith.constant dense<0.000000e+00> : vector<8x128xf32>
    %144 = tpu.matmul %122, %2, %cst_31 {dimension_numbers = #tpu.dot_dimension_numbers<[1], [0], [0], [1], [0, 0, 1, 1], [], []>} : vector<8x32xf32>, vector<32x128xf32>, vector<8x128xf32> -> vector<8x128xf32>
    %145 = arith.addf %143, %144 : vector<8x128xf32>
    %146 = arith.negf %145 : vector<8x128xf32>
    %147 = math.exp %146 : vector<8x128xf32>
    %cst_32 = arith.constant 1.000000e+00 : f32
    %148 = vector.broadcast %cst_32 : f32 to vector<8x128xf32>
    %149 = arith.addf %148, %147 : vector<8x128xf32>
    %150 = arith.divf %148, %149 : vector<8x128xf32>
    %151 = vector.extract_strided_slice %150 {offsets = [0, 0], sizes = [8, 32], strides = [1, 1]} : vector<8x128xf32> to vector<8x32xf32>
    %152 = vector.extract_strided_slice %150 {offsets = [0, 32], sizes = [8, 32], strides = [1, 1]} : vector<8x128xf32> to vector<8x32xf32>
    %153 = vector.extract_strided_slice %150 {offsets = [0, 96], sizes = [8, 32], strides = [1, 1]} : vector<8x128xf32> to vector<8x32xf32>
    %154 = vector.extract_strided_slice %145 {offsets = [0, 64], sizes = [8, 32], strides = [1, 1]} : vector<8x128xf32> to vector<8x32xf32>
    %155 = math.tanh %154 : vector<8x32xf32>
    %156 = arith.mulf %152, %120 : vector<8x32xf32>
    %157 = arith.mulf %151, %155 : vector<8x32xf32>
    %158 = arith.addf %156, %157 : vector<8x32xf32>
    %159 = math.tanh %158 : vector<8x32xf32>
    %160 = arith.mulf %153, %159 : vector<8x32xf32>
    %cst_33 = arith.constant dense<0.000000e+00> : vector<8x128xf32>
    %161 = tpu.matmul %122, %1, %cst_33 {dimension_numbers = #tpu.dot_dimension_numbers<[1], [0], [0], [1], [0, 0, 1, 1], [], []>} : vector<8x32xf32>, vector<32x128xf32>, vector<8x128xf32> -> vector<8x128xf32>
    %162 = vector.broadcast %5 : vector<1x128xf32> to vector<8x128xf32>
    %163 = arith.addf %161, %162 : vector<8x128xf32>
    %cst_34 = arith.constant dense<0.000000e+00> : vector<8x128xf32>
    %164 = tpu.matmul %142, %3, %cst_34 {dimension_numbers = #tpu.dot_dimension_numbers<[1], [0], [0], [1], [0, 0, 1, 1], [], []>} : vector<8x32xf32>, vector<32x128xf32>, vector<8x128xf32> -> vector<8x128xf32>
    %165 = arith.addf %163, %164 : vector<8x128xf32>
    %166 = arith.negf %165 : vector<8x128xf32>
    %167 = math.exp %166 : vector<8x128xf32>
    %cst_35 = arith.constant 1.000000e+00 : f32
    %168 = vector.broadcast %cst_35 : f32 to vector<8x128xf32>
    %169 = arith.addf %168, %167 : vector<8x128xf32>
    %170 = arith.divf %168, %169 : vector<8x128xf32>
    %171 = vector.extract_strided_slice %170 {offsets = [0, 0], sizes = [8, 32], strides = [1, 1]} : vector<8x128xf32> to vector<8x32xf32>
    %172 = vector.extract_strided_slice %170 {offsets = [0, 32], sizes = [8, 32], strides = [1, 1]} : vector<8x128xf32> to vector<8x32xf32>
    %173 = vector.extract_strided_slice %170 {offsets = [0, 96], sizes = [8, 32], strides = [1, 1]} : vector<8x128xf32> to vector<8x32xf32>
    %174 = vector.extract_strided_slice %165 {offsets = [0, 64], sizes = [8, 32], strides = [1, 1]} : vector<8x128xf32> to vector<8x32xf32>
    %175 = math.tanh %174 : vector<8x32xf32>
    %176 = arith.mulf %172, %140 : vector<8x32xf32>
    %177 = arith.mulf %171, %175 : vector<8x32xf32>
    %178 = arith.addf %176, %177 : vector<8x32xf32>
    %179 = math.tanh %178 : vector<8x32xf32>
    %180 = arith.mulf %173, %179 : vector<8x32xf32>
    %181 = vector.extract_strided_slice %9 {offsets = [40, 0], sizes = [8, 128], strides = [1, 1]} : vector<64x128xf32> to vector<8x128xf32>
    %cst_36 = arith.constant dense<0.000000e+00> : vector<8x128xf32>
    %182 = tpu.matmul %160, %2, %cst_36 {dimension_numbers = #tpu.dot_dimension_numbers<[1], [0], [0], [1], [0, 0, 1, 1], [], []>} : vector<8x32xf32>, vector<32x128xf32>, vector<8x128xf32> -> vector<8x128xf32>
    %183 = arith.addf %181, %182 : vector<8x128xf32>
    %184 = arith.negf %183 : vector<8x128xf32>
    %185 = math.exp %184 : vector<8x128xf32>
    %cst_37 = arith.constant 1.000000e+00 : f32
    %186 = vector.broadcast %cst_37 : f32 to vector<8x128xf32>
    %187 = arith.addf %186, %185 : vector<8x128xf32>
    %188 = arith.divf %186, %187 : vector<8x128xf32>
    %189 = vector.extract_strided_slice %188 {offsets = [0, 0], sizes = [8, 32], strides = [1, 1]} : vector<8x128xf32> to vector<8x32xf32>
    %190 = vector.extract_strided_slice %188 {offsets = [0, 32], sizes = [8, 32], strides = [1, 1]} : vector<8x128xf32> to vector<8x32xf32>
    %191 = vector.extract_strided_slice %188 {offsets = [0, 96], sizes = [8, 32], strides = [1, 1]} : vector<8x128xf32> to vector<8x32xf32>
    %192 = vector.extract_strided_slice %183 {offsets = [0, 64], sizes = [8, 32], strides = [1, 1]} : vector<8x128xf32> to vector<8x32xf32>
    %193 = math.tanh %192 : vector<8x32xf32>
    %194 = arith.mulf %190, %158 : vector<8x32xf32>
    %195 = arith.mulf %189, %193 : vector<8x32xf32>
    %196 = arith.addf %194, %195 : vector<8x32xf32>
    %197 = math.tanh %196 : vector<8x32xf32>
    %198 = arith.mulf %191, %197 : vector<8x32xf32>
    %cst_38 = arith.constant dense<0.000000e+00> : vector<8x128xf32>
    %199 = tpu.matmul %160, %1, %cst_38 {dimension_numbers = #tpu.dot_dimension_numbers<[1], [0], [0], [1], [0, 0, 1, 1], [], []>} : vector<8x32xf32>, vector<32x128xf32>, vector<8x128xf32> -> vector<8x128xf32>
    %200 = vector.broadcast %5 : vector<1x128xf32> to vector<8x128xf32>
    %201 = arith.addf %199, %200 : vector<8x128xf32>
    %cst_39 = arith.constant dense<0.000000e+00> : vector<8x128xf32>
    %202 = tpu.matmul %180, %3, %cst_39 {dimension_numbers = #tpu.dot_dimension_numbers<[1], [0], [0], [1], [0, 0, 1, 1], [], []>} : vector<8x32xf32>, vector<32x128xf32>, vector<8x128xf32> -> vector<8x128xf32>
    %203 = arith.addf %201, %202 : vector<8x128xf32>
    %204 = arith.negf %203 : vector<8x128xf32>
    %205 = math.exp %204 : vector<8x128xf32>
    %cst_40 = arith.constant 1.000000e+00 : f32
    %206 = vector.broadcast %cst_40 : f32 to vector<8x128xf32>
    %207 = arith.addf %206, %205 : vector<8x128xf32>
    %208 = arith.divf %206, %207 : vector<8x128xf32>
    %209 = vector.extract_strided_slice %208 {offsets = [0, 0], sizes = [8, 32], strides = [1, 1]} : vector<8x128xf32> to vector<8x32xf32>
    %210 = vector.extract_strided_slice %208 {offsets = [0, 32], sizes = [8, 32], strides = [1, 1]} : vector<8x128xf32> to vector<8x32xf32>
    %211 = vector.extract_strided_slice %208 {offsets = [0, 96], sizes = [8, 32], strides = [1, 1]} : vector<8x128xf32> to vector<8x32xf32>
    %212 = vector.extract_strided_slice %203 {offsets = [0, 64], sizes = [8, 32], strides = [1, 1]} : vector<8x128xf32> to vector<8x32xf32>
    %213 = math.tanh %212 : vector<8x32xf32>
    %214 = arith.mulf %210, %178 : vector<8x32xf32>
    %215 = arith.mulf %209, %213 : vector<8x32xf32>
    %216 = arith.addf %214, %215 : vector<8x32xf32>
    %217 = math.tanh %216 : vector<8x32xf32>
    %218 = arith.mulf %211, %217 : vector<8x32xf32>
    %219 = vector.extract_strided_slice %9 {offsets = [48, 0], sizes = [8, 128], strides = [1, 1]} : vector<64x128xf32> to vector<8x128xf32>
    %cst_41 = arith.constant dense<0.000000e+00> : vector<8x128xf32>
    %220 = tpu.matmul %198, %2, %cst_41 {dimension_numbers = #tpu.dot_dimension_numbers<[1], [0], [0], [1], [0, 0, 1, 1], [], []>} : vector<8x32xf32>, vector<32x128xf32>, vector<8x128xf32> -> vector<8x128xf32>
    %221 = arith.addf %219, %220 : vector<8x128xf32>
    %222 = arith.negf %221 : vector<8x128xf32>
    %223 = math.exp %222 : vector<8x128xf32>
    %cst_42 = arith.constant 1.000000e+00 : f32
    %224 = vector.broadcast %cst_42 : f32 to vector<8x128xf32>
    %225 = arith.addf %224, %223 : vector<8x128xf32>
    %226 = arith.divf %224, %225 : vector<8x128xf32>
    %227 = vector.extract_strided_slice %226 {offsets = [0, 0], sizes = [8, 32], strides = [1, 1]} : vector<8x128xf32> to vector<8x32xf32>
    %228 = vector.extract_strided_slice %226 {offsets = [0, 32], sizes = [8, 32], strides = [1, 1]} : vector<8x128xf32> to vector<8x32xf32>
    %229 = vector.extract_strided_slice %226 {offsets = [0, 96], sizes = [8, 32], strides = [1, 1]} : vector<8x128xf32> to vector<8x32xf32>
    %230 = vector.extract_strided_slice %221 {offsets = [0, 64], sizes = [8, 32], strides = [1, 1]} : vector<8x128xf32> to vector<8x32xf32>
    %231 = math.tanh %230 : vector<8x32xf32>
    %232 = arith.mulf %228, %196 : vector<8x32xf32>
    %233 = arith.mulf %227, %231 : vector<8x32xf32>
    %234 = arith.addf %232, %233 : vector<8x32xf32>
    %235 = math.tanh %234 : vector<8x32xf32>
    %236 = arith.mulf %229, %235 : vector<8x32xf32>
    %cst_43 = arith.constant dense<0.000000e+00> : vector<8x128xf32>
    %237 = tpu.matmul %198, %1, %cst_43 {dimension_numbers = #tpu.dot_dimension_numbers<[1], [0], [0], [1], [0, 0, 1, 1], [], []>} : vector<8x32xf32>, vector<32x128xf32>, vector<8x128xf32> -> vector<8x128xf32>
    %238 = vector.broadcast %5 : vector<1x128xf32> to vector<8x128xf32>
    %239 = arith.addf %237, %238 : vector<8x128xf32>
    %cst_44 = arith.constant dense<0.000000e+00> : vector<8x128xf32>
    %240 = tpu.matmul %218, %3, %cst_44 {dimension_numbers = #tpu.dot_dimension_numbers<[1], [0], [0], [1], [0, 0, 1, 1], [], []>} : vector<8x32xf32>, vector<32x128xf32>, vector<8x128xf32> -> vector<8x128xf32>
    %241 = arith.addf %239, %240 : vector<8x128xf32>
    %242 = arith.negf %241 : vector<8x128xf32>
    %243 = math.exp %242 : vector<8x128xf32>
    %cst_45 = arith.constant 1.000000e+00 : f32
    %244 = vector.broadcast %cst_45 : f32 to vector<8x128xf32>
    %245 = arith.addf %244, %243 : vector<8x128xf32>
    %246 = arith.divf %244, %245 : vector<8x128xf32>
    %247 = vector.extract_strided_slice %246 {offsets = [0, 0], sizes = [8, 32], strides = [1, 1]} : vector<8x128xf32> to vector<8x32xf32>
    %248 = vector.extract_strided_slice %246 {offsets = [0, 32], sizes = [8, 32], strides = [1, 1]} : vector<8x128xf32> to vector<8x32xf32>
    %249 = vector.extract_strided_slice %246 {offsets = [0, 96], sizes = [8, 32], strides = [1, 1]} : vector<8x128xf32> to vector<8x32xf32>
    %250 = vector.extract_strided_slice %241 {offsets = [0, 64], sizes = [8, 32], strides = [1, 1]} : vector<8x128xf32> to vector<8x32xf32>
    %251 = math.tanh %250 : vector<8x32xf32>
    %252 = arith.mulf %248, %216 : vector<8x32xf32>
    %253 = arith.mulf %247, %251 : vector<8x32xf32>
    %254 = arith.addf %252, %253 : vector<8x32xf32>
    %255 = math.tanh %254 : vector<8x32xf32>
    %256 = arith.mulf %249, %255 : vector<8x32xf32>
    %257 = vector.extract_strided_slice %9 {offsets = [56, 0], sizes = [8, 128], strides = [1, 1]} : vector<64x128xf32> to vector<8x128xf32>
    %cst_46 = arith.constant dense<0.000000e+00> : vector<8x128xf32>
    %258 = tpu.matmul %236, %2, %cst_46 {dimension_numbers = #tpu.dot_dimension_numbers<[1], [0], [0], [1], [0, 0, 1, 1], [], []>} : vector<8x32xf32>, vector<32x128xf32>, vector<8x128xf32> -> vector<8x128xf32>
    %259 = arith.addf %257, %258 : vector<8x128xf32>
    %260 = arith.negf %259 : vector<8x128xf32>
    %261 = math.exp %260 : vector<8x128xf32>
    %cst_47 = arith.constant 1.000000e+00 : f32
    %262 = vector.broadcast %cst_47 : f32 to vector<8x128xf32>
    %263 = arith.addf %262, %261 : vector<8x128xf32>
    %264 = arith.divf %262, %263 : vector<8x128xf32>
    %265 = vector.extract_strided_slice %264 {offsets = [0, 0], sizes = [8, 32], strides = [1, 1]} : vector<8x128xf32> to vector<8x32xf32>
    %266 = vector.extract_strided_slice %264 {offsets = [0, 32], sizes = [8, 32], strides = [1, 1]} : vector<8x128xf32> to vector<8x32xf32>
    %267 = vector.extract_strided_slice %264 {offsets = [0, 96], sizes = [8, 32], strides = [1, 1]} : vector<8x128xf32> to vector<8x32xf32>
    %268 = vector.extract_strided_slice %259 {offsets = [0, 64], sizes = [8, 32], strides = [1, 1]} : vector<8x128xf32> to vector<8x32xf32>
    %269 = math.tanh %268 : vector<8x32xf32>
    %270 = arith.mulf %266, %234 : vector<8x32xf32>
    %271 = arith.mulf %265, %269 : vector<8x32xf32>
    %272 = arith.addf %270, %271 : vector<8x32xf32>
    %273 = math.tanh %272 : vector<8x32xf32>
    %274 = arith.mulf %267, %273 : vector<8x32xf32>
    %cst_48 = arith.constant dense<0.000000e+00> : vector<8x128xf32>
    %275 = tpu.matmul %236, %1, %cst_48 {dimension_numbers = #tpu.dot_dimension_numbers<[1], [0], [0], [1], [0, 0, 1, 1], [], []>} : vector<8x32xf32>, vector<32x128xf32>, vector<8x128xf32> -> vector<8x128xf32>
    %276 = vector.broadcast %5 : vector<1x128xf32> to vector<8x128xf32>
    %277 = arith.addf %275, %276 : vector<8x128xf32>
    %cst_49 = arith.constant dense<0.000000e+00> : vector<8x128xf32>
    %278 = tpu.matmul %256, %3, %cst_49 {dimension_numbers = #tpu.dot_dimension_numbers<[1], [0], [0], [1], [0, 0, 1, 1], [], []>} : vector<8x32xf32>, vector<32x128xf32>, vector<8x128xf32> -> vector<8x128xf32>
    %279 = arith.addf %277, %278 : vector<8x128xf32>
    %280 = arith.negf %279 : vector<8x128xf32>
    %281 = math.exp %280 : vector<8x128xf32>
    %cst_50 = arith.constant 1.000000e+00 : f32
    %282 = vector.broadcast %cst_50 : f32 to vector<8x128xf32>
    %283 = arith.addf %282, %281 : vector<8x128xf32>
    %284 = arith.divf %282, %283 : vector<8x128xf32>
    %285 = vector.extract_strided_slice %284 {offsets = [0, 0], sizes = [8, 32], strides = [1, 1]} : vector<8x128xf32> to vector<8x32xf32>
    %286 = vector.extract_strided_slice %284 {offsets = [0, 32], sizes = [8, 32], strides = [1, 1]} : vector<8x128xf32> to vector<8x32xf32>
    %287 = vector.extract_strided_slice %284 {offsets = [0, 96], sizes = [8, 32], strides = [1, 1]} : vector<8x128xf32> to vector<8x32xf32>
    %288 = vector.extract_strided_slice %279 {offsets = [0, 64], sizes = [8, 32], strides = [1, 1]} : vector<8x128xf32> to vector<8x32xf32>
    %289 = math.tanh %288 : vector<8x32xf32>
    %290 = arith.mulf %286, %254 : vector<8x32xf32>
    %291 = arith.mulf %285, %289 : vector<8x32xf32>
    %292 = arith.addf %290, %291 : vector<8x32xf32>
    %293 = math.tanh %292 : vector<8x32xf32>
    %294 = arith.mulf %287, %293 : vector<8x32xf32>
    %cst_51 = arith.constant dense<0.000000e+00> : vector<8x128xf32>
    %295 = tpu.matmul %274, %1, %cst_51 {dimension_numbers = #tpu.dot_dimension_numbers<[1], [0], [0], [1], [0, 0, 1, 1], [], []>} : vector<8x32xf32>, vector<32x128xf32>, vector<8x128xf32> -> vector<8x128xf32>
    %296 = vector.broadcast %5 : vector<1x128xf32> to vector<8x128xf32>
    %297 = arith.addf %295, %296 : vector<8x128xf32>
    %cst_52 = arith.constant dense<0.000000e+00> : vector<8x128xf32>
    %298 = tpu.matmul %294, %3, %cst_52 {dimension_numbers = #tpu.dot_dimension_numbers<[1], [0], [0], [1], [0, 0, 1, 1], [], []>} : vector<8x32xf32>, vector<32x128xf32>, vector<8x128xf32> -> vector<8x128xf32>
    %299 = arith.addf %297, %298 : vector<8x128xf32>
    %300 = arith.negf %299 : vector<8x128xf32>
    %301 = math.exp %300 : vector<8x128xf32>
    %cst_53 = arith.constant 1.000000e+00 : f32
    %302 = vector.broadcast %cst_53 : f32 to vector<8x128xf32>
    %303 = arith.addf %302, %301 : vector<8x128xf32>
    %304 = arith.divf %302, %303 : vector<8x128xf32>
    %305 = vector.extract_strided_slice %304 {offsets = [0, 0], sizes = [8, 32], strides = [1, 1]} : vector<8x128xf32> to vector<8x32xf32>
    %306 = vector.extract_strided_slice %304 {offsets = [0, 32], sizes = [8, 32], strides = [1, 1]} : vector<8x128xf32> to vector<8x32xf32>
    %307 = vector.extract_strided_slice %304 {offsets = [0, 96], sizes = [8, 32], strides = [1, 1]} : vector<8x128xf32> to vector<8x32xf32>
    %308 = vector.extract_strided_slice %299 {offsets = [0, 64], sizes = [8, 32], strides = [1, 1]} : vector<8x128xf32> to vector<8x32xf32>
    %309 = math.tanh %308 : vector<8x32xf32>
    %310 = arith.mulf %306, %292 : vector<8x32xf32>
    %311 = arith.mulf %305, %309 : vector<8x32xf32>
    %312 = arith.addf %310, %311 : vector<8x32xf32>
    %313 = math.tanh %312 : vector<8x32xf32>
    %314 = arith.mulf %307, %313 : vector<8x32xf32>
    %315 = tpu.concatenate %66, %104, %142, %180, %218, %256, %294, %314 in 0 : vector<8x32xf32>, vector<8x32xf32>, vector<8x32xf32>, vector<8x32xf32>, vector<8x32xf32>, vector<8x32xf32>, vector<8x32xf32>, vector<8x32xf32> -> vector<64x32xf32>
    %c0_54 = arith.constant 0 : index
    %c0_55 = arith.constant 0 : index
    %316 = vector.load %arg7[%c0_54, %c0_55] : memref<64x32xf32, #tpu.memory_space<vmem>>, vector<64x32xf32>
    tpu.vector_store %arg7[%c0_54, %c0_55], %315 {strides = array<i32>} : memref<64x32xf32, #tpu.memory_space<vmem>>, vector<64x32xf32>,
    %c0_56 = arith.constant 0 : index
    %c0_57 = arith.constant 0 : index
    %c0_58 = arith.constant 0 : index
    %317 = vector.load %arg8[%c0_56, %c0_57, %c0_58] : memref<2x8x32xf32, #tpu.memory_space<vmem>>, vector<1x8x32xf32>
    %318 = vector.shape_cast %317 : vector<1x8x32xf32> to vector<8x32xf32>
    %319 = vector.shape_cast %274 : vector<8x32xf32> to vector<1x8x32xf32>
    tpu.vector_store %arg8[%c0_56, %c0_57, %c0_58], %319 {strides = array<i32>} : memref<2x8x32xf32, #tpu.memory_space<vmem>>, vector<1x8x32xf32>,
    %c0_59 = arith.constant 0 : index
    %c0_60 = arith.constant 0 : index
    %c0_61 = arith.constant 0 : index
    %320 = vector.load %arg9[%c0_59, %c0_60, %c0_61] : memref<2x8x32xf32, #tpu.memory_space<vmem>>, vector<1x8x32xf32>
    %321 = vector.shape_cast %320 : vector<1x8x32xf32> to vector<8x32xf32>
    %322 = vector.shape_cast %272 : vector<8x32xf32> to vector<1x8x32xf32>
    tpu.vector_store %arg9[%c0_59, %c0_60, %c0_61], %322 {strides = array<i32>} : memref<2x8x32xf32, #tpu.memory_space<vmem>>, vector<1x8x32xf32>,
    %c1 = arith.constant 1 : index
    %c0_62 = arith.constant 0 : index
    %c0_63 = arith.constant 0 : index
    %323 = vector.load %arg8[%c1, %c0_62, %c0_63] : memref<2x8x32xf32, #tpu.memory_space<vmem>>, vector<1x8x32xf32>
    %324 = vector.shape_cast %323 : vector<1x8x32xf32> to vector<8x32xf32>
    %325 = vector.shape_cast %314 : vector<8x32xf32> to vector<1x8x32xf32>
    tpu.vector_store %arg8[%c1, %c0_62, %c0_63], %325 {strides = array<i32>} : memref<2x8x32xf32, #tpu.memory_space<vmem>>, vector<1x8x32xf32>,
    %c1_64 = arith.constant 1 : index
    %c0_65 = arith.constant 0 : index
    %c0_66 = arith.constant 0 : index
    %326 = vector.load %arg9[%c1_64, %c0_65, %c0_66] : memref<2x8x32xf32, #tpu.memory_space<vmem>>, vector<1x8x32xf32>
    %327 = vector.shape_cast %326 : vector<1x8x32xf32> to vector<8x32xf32>
    %328 = vector.shape_cast %312 : vector<8x32xf32> to vector<1x8x32xf32>
    tpu.vector_store %arg9[%c1_64, %c0_65, %c0_66], %328 {strides = array<i32>} : memref<2x8x32xf32, #tpu.memory_space<vmem>>, vector<1x8x32xf32>,
    return
  }
}

</mosaic_0001>

<bundles_post_ra>
// kernel: lrcn_forward.1
= control target key start
LH: loop header
LB: loop body
LE: loop exit
PB: predicated region body
PF: predicated region fallthrough
CT: control target
= control target key end

     0   :  { %15 = vsyncpa [#allocation3], 0  ;;  %vm61_vm0 = vcmask 130048   ;;  %v3242_v3 = vmov 0.0|0.0   ;;  %vm3243_vm1 = vmmov 0   ;;  %v3244_v10 = vmov 0.0   ;;  %s3771_s0 = inlined_call_operand.vmem [shape: f32[64,16], index: 0, kind: input, shape index: {}]   ;;  %s3772_s1 = inlined_call_operand.vmem [shape: f32[16,128], index: 1, kind: input, shape index: {}]   ;;  %s3773_s2 = inlined_call_operand.vmem [shape: f32[32,128], index: 2, kind: input, shape index: {}]   ;;  %s3774_s3 = inlined_call_operand.vmem [shape: f32[1,128], index: 3, kind: input, shape index: {}]   ;;  %s3775_s4 = inlined_call_operand.vmem [shape: f32[32,128], index: 4, kind: input, shape index: {}]   ;;  %s3776_s5 = inlined_call_operand.vmem [shape: f32[32,128], index: 5, kind: input, shape index: {}]   ;;  %s3777_s6 = inlined_call_operand.vmem [shape: f32[1,128], index: 6, kind: input, shape index: {}]   ;;  %s3778_s7 = inlined_call_operand.vmem [shape: f32[64,32], index: 7, kind: output, shape index: {0}]   ;;  %s3779_s8 = inlined_call_operand.hbm [shape: f32[2,8,32], index: 8, kind: output, shape index: {1}]   ;;  %s3780_s9 = inlined_call_operand.hbm [shape: f32[2,8,32], index: 9, kind: output, shape index: {2}]  }
   0x1   :  { %v31_v0 = vld [vmem:[%s3772_s1] sm:$0xff]  ;;  %v32_v1 = vld [vmem:[%s3772_s1 + $0x8] sm:$0xff]  ;;  %2888 = vmatprep.subr.bf16.mxu1 %v3242_v3  ;;  %v39_v8 = vld [vmem:[%s3773_s2 + $0x10] sm:$0xff]  ;;  %2628 = vmatprep.mubr.msk.f32.mxu1 %vm3243_vm1, %v3244_v10 }
   0x2   :  { %v37_v2 = vld [vmem:[%s3773_s2] sm:$0xff]  ;;  %v2884_v4 = vpack.c.bf16 %v32_v1, %v31_v0  ;;  %v38_v5 = vld [vmem:[%s3773_s2 + $0x8] sm:$0xff]  ;;  %v40_v9 = vld [vmem:[%s3773_s2 + $0x18] sm:$0xff] }
   0x3   :  { %v47_v6 = vld [vmem:[%s3771_s0] sm:$0xff]  ;;  %v3318_v7 = vpack.c.bf16 %v38_v5, %v37_v2 }
   0x4   :  { %2608 = vmatprep.mubr.msk.f32.mxu0 %vm61_vm0, %v47_v6 }
   0x5   :  { %16 = vsyncpa [#allocation5], 0  ;;  %2885 = vmatprep.subr.bf16.mxu0 %v2884_v4  ;;  %2890 = vmatpush3.bf16.msra.mxu1 %v3318_v7  ;;  %v48_v11 = vld [vmem:[%s3771_s0 + $0x8] sm:$0xff]  ;;  %v3333_v12 = vpack.c.bf16 %v40_v9, %v39_v8  ;;  %v3350_v13 = vld [vmem:[%s3774_s3] ss:$0 sm:$0xff]  ;;  %s3245_s25 = smov 64  }
   0x6   :  { %2887 = vmatpush3.bf16.msra.mxu0 %v2884_v4  ;;  %2891 = vmatprep.subr.bf16.mxu1 %v3242_v3  ;;  %s3246_s3 = smov 32   ;;  %v49_v30 = vld [vmem:[%s3771_s0 + $0x10] sm:$0xff]  ;;  %v50_v31 = vld [vmem:[%s3771_s0 + $0x18] sm:$0xff]  ;;  %v51_v32 = vld [vmem:[%s3771_s0 + $0x20] sm:$0xff]  ;;  %vm191_vm2 = vcmask 261120   ;;  %s3247_s22 = smov 96  }
   0x7   :  { %2900 = vmatprep.subr.bf16.mxu0 %v3242_v3  ;;  %v33_v33 = vld [vmem:[%s3775_s4] sm:$0xff]  ;;  %v34_v34 = vld [vmem:[%s3775_s4 + $0x8] sm:$0xff]  ;;  %v35_v36 = vld [vmem:[%s3775_s4 + $0x10] sm:$0xff]  ;;  %s3248_s23 = smov [#allocation2]  }
   0x8   :  { %v3377_v35 = vpack.c.bf16 %v34_v34, %v33_v33  ;;  %v52_v37 = vld [vmem:[%s3771_s0 + $0x28] sm:$0xff]  ;;  %v36_v38 = vld [vmem:[%s3775_s4 + $0x18] sm:$0xff]  ;;  %v53_v39 = vld [vmem:[%s3771_s0 + $0x30] sm:$0xff]  ;;  %s3249_s4 = smov [#allocation4]  }
   0x9   :  { %2609 = vmatmul.mubr.msk.f32.vlgmr.msra.gmra.mrb[0].mxu0 %vm61_vm0, %v48_v11  ;;  %2893 = vmatpush3.bf16.msra.mxu1 %v3333_v12  ;;  %v3393_v40 = vpack.c.bf16 %v36_v38, %v35_v36  ;;  %v54_v41 = vld [vmem:[%s3771_s0 + $0x38] sm:$0xff]  ;;  %v41_v49 = vld [vmem:[%s3776_s5] sm:$0xff]  ;;  %v42_v50 = vld [vmem:[%s3776_s5 + $0x8] sm:$0xff]  ;;  %s2397_s0 = sshll.u32 %s3248_s23, 4  ;;  %s2409_s2 = sshll.u32 %s3249_s4, 4  ;;  %s2398_s0 = int_to_ptr.vmem [resolvable:$true] %s2397_s0  ;;  %s2410_s2 = int_to_ptr.vmem [resolvable:$true] %s2409_s2 }
   0xa   :  { %2894 = vmatprep.subr.bf16.mxu1 %v3242_v3  ;;  %2611 = vmatprep.mubr.msk.f32.mxu0 %vm61_vm0, %v49_v30  ;;  %v3422_v51 = vpack.c.bf16 %v42_v50, %v41_v49  ;;  %v43_v52 = vld [vmem:[%s3776_s5 + $0x10] sm:$0xff]  ;;  %v44_v53 = vld [vmem:[%s3776_s5 + $0x18] sm:$0xff]  ;;  %v3462_v62 = vld [vmem:[%s3777_s6] ss:$0 sm:$0xff]  ;;  %p3199_p1 = scmp.lt.s32.totalorder %s2398_s0, %s2398_s0 }
   0xb   :  { %2902 = vmatpush3.bf16.msra.mxu0 %v3377_v35  ;;  %v3433_v55 = vpack.c.bf16 %v44_v53, %v43_v52 }
   0xc   :  { %2629 = vmatmul.mubr.f32.vlgmr.msra.gmra.mrb[0].mxu1 %v3244_v10  ;;  %2903 = vmatprep.subr.bf16.mxu0 %v3242_v3 }
   0xd   :  { %2896 = vmatpush3.bf16.msra.mxu1 %v3318_v7  ;;  %2639 = vmatprep.mubr.msk.f32.mxu1 %vm3243_vm1, %v3244_v10 }
   0xe   :  { %2897 = vmatprep.subr.bf16.mxu1 %v3242_v3  ;;  %2612 = vmatmul.mubr.msk.f32.gmra.mrb[2].mxu0 %vm61_vm0, %v50_v31 }
   0xf   :  { %2614 = vmatprep.mubr.msk.f32.mxu0 %vm61_vm0, %v51_v32  ;;  %2905 = vmatpush3.bf16.msra.mxu0 %v3393_v40 }
  0x10   :  { %2906 = vmatprep.subr.bf16.mxu0 %v3242_v3 }
  0x11   :  { %2899 = vmatpush3.bf16.msra.mxu1 %v3333_v12 }
  0x12   :  { %2912 = vmatprep.subr.bf16.mxu1 %v3242_v3  ;;  %2615 = vmatmul.mubr.msk.f32.gmra.mrb[4].mxu0 %vm61_vm0, %v52_v37 }
  0x13   :  { %2617 = vmatprep.mubr.msk.f32.mxu0 %vm61_vm0, %v53_v39 }
  0x16   :  { %2618 = vmatmul.mubr.msk.f32.gmra.mrb[6].mxu0 %vm61_vm0, %v54_v41 }
  0x17   :  { %2650 = vmatprep.mubr.msk.f32.mxu0 %vm3243_vm1, %v3244_v10 }
  0xdc   :  { %v3352_v14 = vpop.f32.mrb[0].mxu0 }
  0xdd   :  { %v152_v15 = vpop.f32.mrb[1].mxu0  ;;  %v158_v58 = vadd.f32 %v3352_v14, %v3350_v13 }
  0xde   :  { %v153_v16 = vadd.f32 %v3350_v13, %v152_v15 }
  0xdf   :  { %v261_v17 = vpop.f32.mrb[0].mxu1 }
  0xe0   :  { %v265_v18 = vadd.f32 %v261_v17, %v153_v16  ;;  %v2630_v19 = vpop.f32.mrb[1].mxu1 }
  0xe1   :  { %v3408_v45 = vpop.f32.mrb[2].mxu0 }
  0xe2   :  { %3066 = vtanh.f32 %v265_v18  ;;  %v2435_v21 = vmul.f32 -1.442695, %v265_v18  ;;  %v3410_v46 = vpop.f32.mrb[3].mxu0 }
  0xe3   :  { %v163_v36 = vadd.f32 %v3350_v13, %v3410_v46 }
  0xe4   :  { %3068 = vpow2.f32 %v2435_v21 }
  0xe5   :  { %v3412_v47 = vpop.f32.mrb[4].mxu0 }
  0xe6   :  { %v3414_v48 = vpop.f32.mrb[5].mxu0 }
  0xe9   :  { %v3453_v56 = vpop.f32.mrb[6].mxu0 }
  0xea   :  { %v3455_v57 = vpop.f32.mrb[7].mxu0 }
  0xec   :  { %v3067_v20 = vpop.eup %3066 }
  0xed   :  { %275 = vrot.lane.b32.xlu0 %v3067_v20, %s3245_s25 }
  0xee   :  { %v3069_v22 = vpop.eup %3068 }
  0xef   :  { %v269_v23 = vadd.f32 1.0, %v3069_v22 }
  0xf1   :  { %3070 = vrcp.f32 %v269_v23 }
  0xfb   :  { %v3071_v24 = vpop.eup %3070 }
  0xfc   :  { %v273_v27 = vmul.f32 0.0, %v3071_v24 }
 0x15f   :  { %v276_v25 = vpop.permute.xlu0 %275 }
 0x160   :  { %v278_v26 = vmul.f32 %v3071_v24, %v276_v25 }
 0x162   :  { %280 = vrot.lane.b32.xlu0 %v278_v26, %s3246_s3 }
 0x1d4   :  { %v281_v28 = vpop.permute.xlu0 %280 }
 0x1d5   :  { %v3357_v29 = vadd.f32 %v281_v28, %v273_v27 }
 0x1d7   :  { %3072 = vtanh.f32 %v3357_v29 }
 0x1e1   :  { %v3073_v42 = vpop.eup %3072 }
 0x1e2   :  { %286 = vrot.lane.b32.xlu1 %v3073_v42, %s3245_s25 }
 0x254   :  { %v287_v43 = vpop.permute.xlu1 %286 }
 0x255   :  { %v289_v44 = vmul.f32 %v3071_v24, %v287_v43 }
 0x257   :  { %291 = vrot.lane.b32.xlu1 %v289_v44, %s3246_s3 }
 0x2c9   :  { %v292_v54 = vpop.permute.xlu1 %291 }
 0x2ca   :  { %2640 = vmatmul.mubr.msk.f32.vlgmr.msra.gmra.mrb[2].mxu1 %vm191_vm2, %v292_v54  ;;  %2651 = vmatmul.mubr.msk.f32.vlgmr.msra.gmra.mrb[8].mxu0 %vm191_vm2, %v292_v54 }
 0x2cb   :  { %2908 = vmatpush3.bf16.msra.mxu0 %v3422_v51  ;;  %2661 = vmatprep.mubr.msk.f32.mxu0 %vm3243_vm1, %v3244_v10 }
 0x2cc   :  { %2909 = vmatprep.subr.bf16.mxu0 %v3242_v3  ;;  %2914 = vmatpush3.bf16.msra.mxu1 %v3318_v7 }
 0x2cd   :  { %2915 = vmatprep.subr.bf16.mxu1 %v3242_v3  ;;  %2672 = vmatprep.mubr.msk.f32.mxu1 %vm3243_vm1, %v3244_v10 }
 0x2cf   :  { %2911 = vmatpush3.bf16.msra.mxu0 %v3433_v55 }
 0x2d0   :  { %2917 = vmatpush3.bf16.msra.mxu1 %v3333_v12  ;;  %2930 = vmatprep.subr.bf16.mxu0 %v3242_v3 }
 0x2d1   :  { %2918 = vmatprep.subr.bf16.mxu1 %v3242_v3 }
 0x2d2   :  { %2662 = vmatmul.mubr.f32.vlgmr.msra.gmra.mrb[8].mxu0 %v3244_v10 }
 0x2d3   :  { %2932 = vmatpush3.bf16.msra.mxu0 %v3318_v7  ;;  %2705 = vmatprep.mubr.msk.f32.mxu0 %vm3243_vm1, %v3244_v10 }
 0x2d4   :  { %2933 = vmatprep.subr.bf16.mxu0 %v3242_v3 }
 0x2d7   :  { %2935 = vmatpush3.bf16.msra.mxu0 %v3333_v12 }
 0x2d8   :  { %2936 = vmatprep.subr.bf16.mxu0 %v3242_v3 }
 0x39d   :  { %v361_v59 = vpop.f32.mrb[2].mxu1 }
 0x39e   :  { %v365_v60 = vadd.f32 %v361_v59, %v158_v58  ;;  %v2641_v61 = vpop.f32.mrb[3].mxu1 }
 0x3a0   :  { %3074 = vtanh.f32 %v365_v60  ;;  %v2437_v5 = vmul.f32 -1.442695, %v365_v60 }
 0x3a5   :  { %v532_v63 = vpop.f32.mrb[8].mxu0 }
 0x3a6   :  { %v3032_v0 = vadd.f32 %v3462_v62, %v532_v63  ;;  %v2663_v1 = vpop.f32.mrb[9].mxu0 }
 0x3a8   :  { %3076 = vtanh.f32 %v3032_v0  ;;  %v2440_v6 = vmul.f32 -1.442695, %v3032_v0 }
 0x3a9   :  { %3078 = vpow2.f32 %v2437_v5 }
 0x3aa   :  { %v3075_v2 = vpop.eup %3074  ;;  %3080 = vpow2.f32 %v2440_v6 }
 0x3ab   :  { %375 = vrot.lane.b32.xlu0 %v3075_v2, %s3245_s25 }
 0x3b2   :  { %v3077_v4 = vpop.eup %3076 }
 0x3b3   :  { %546 = vrot.lane.b32.xlu1 %v3077_v4, %s3245_s25  ;;  %v3079_v8 = vpop.eup %3078 }
 0x3b4   :  { %v369_v9 = vadd.f32 1.0, %v3079_v8  ;;  %v3081_v11 = vpop.eup %3080 }
 0x3b5   :  { %v540_v14 = vadd.f32 1.0, %v3081_v11 }
 0x3b6   :  { %3082 = vrcp.f32 %v369_v9 }
 0x3b7   :  { %3084 = vrcp.f32 %v540_v14 }
 0x3c0   :  { %v3083_v15 = vpop.eup %3082 }
 0x3c1   :  { %v3085_v18 = vpop.eup %3084  ;;  %v373_v21 = vmul.f32 %v3083_v15, %v3357_v29 }
 0x3c2   :  { %v544_v24 = vmul.f32 0.0, %v3085_v18 }
 0x41d   :  { %v376_v16 = vpop.permute.xlu0 %375 }
 0x41e   :  { %v378_v17 = vmul.f32 %v3083_v15, %v376_v16 }
 0x420   :  { %380 = vrot.lane.b32.xlu0 %v378_v17, %s3246_s3 }
 0x425   :  { %v547_v19 = vpop.permute.xlu1 %546 }
 0x426   :  { %v549_v20 = vmul.f32 %v3085_v18, %v547_v19 }
 0x428   :  { %551 = vrot.lane.b32.xlu1 %v549_v20, %s3246_s3 }
 0x492   :  { %v381_v22 = vpop.permute.xlu0 %380 }
 0x493   :  { %v3470_v23 = vadd.f32 %v381_v22, %v373_v21  ;;  %v168_v21 = vadd.f32 %v3408_v45, %v3350_v13 }
 0x495   :  { %3086 = vtanh.f32 %v3470_v23 }
 0x49a   :  { %v552_v25 = vpop.permute.xlu1 %551 }
 0x49b   :  { %v3473_v26 = vadd.f32 %v552_v25, %v544_v24 }
 0x49d   :  { %3088 = vtanh.f32 %v3473_v26 }
 0x49f   :  { %v3087_v27 = vpop.eup %3086 }
 0x4a0   :  { %386 = vrot.lane.b32.xlu0 %v3087_v27, %s3245_s25 }
 0x4a7   :  { %v3089_v28 = vpop.eup %3088 }
 0x4a8   :  { %557 = vrot.lane.b32.xlu1 %v3089_v28, %s3245_s25 }
 0x512   :  { %v387_v30 = vpop.permute.xlu0 %386 }
 0x513   :  { %v389_v31 = vmul.f32 %v3083_v15, %v387_v30 }
 0x515   :  { %562 = vrot.lane.b32.xlu0 %v389_v31, %s3246_s3 }
 0x51a   :  { %v558_v29 = vpop.permute.xlu1 %557 }
 0x51b   :  { %v560_v32 = vmul.f32 %v3085_v18, %v558_v29 }
 0x51d   :  { %732 = vrot.lane.b32.xlu1 %v560_v32, %s3246_s3 }
 0x587   :  { %v563_v33 = vpop.permute.xlu0 %562 }
 0x588   :  { %2673 = vmatmul.mubr.msk.f32.vlgmr.msra.gmra.mrb[4].mxu1 %vm191_vm2, %v563_v33 }
 0x589   :  { %2920 = vmatpush3.bf16.msra.mxu1 %v3377_v35  ;;  %2683 = vmatprep.mubr.msk.f32.mxu1 %vm3243_vm1, %v3244_v10 }
 0x58a   :  { %2921 = vmatprep.subr.bf16.mxu1 %v3242_v3 }
 0x58d   :  { %2923 = vmatpush3.bf16.msra.mxu1 %v3393_v40 }
 0x58e   :  { %2924 = vmatprep.subr.bf16.mxu1 %v3242_v3 }
 0x58f   :  { %v733_v34 = vpop.permute.xlu1 %732 }
 0x590   :  { %2367 = vst.msk [vmem:[%s3778_s7] sm:$0xff] %vm191_vm2, %v733_v34  ;;  %2684 = vmatmul.mubr.msk.f32.vlgmr.msra.gmra.mrb[6].mxu1 %vm191_vm2, %v563_v33 }
 0x591   :  { %2926 = vmatpush3.bf16.msra.mxu1 %v3422_v51  ;;  %2694 = vmatprep.mubr.msk.f32.mxu1 %vm3243_vm1, %v3244_v10 }
 0x592   :  { %2927 = vmatprep.subr.bf16.mxu1 %v3242_v3 }
 0x595   :  { %2929 = vmatpush3.bf16.msra.mxu1 %v3433_v55 }
 0x596   :  { %2948 = vmatprep.subr.bf16.mxu1 %v3242_v3 }
 0x598   :  { %2695 = vmatmul.mubr.msk.f32.vlgmr.msra.gmra.mrb[6].mxu1 %vm191_vm2, %v733_v34 }
 0x599   :  { %2950 = vmatpush3.bf16.msra.mxu1 %v3318_v7  ;;  %2738 = vmatprep.mubr.msk.f32.mxu1 %vm3243_vm1, %v3244_v10 }
 0x59a   :  { %2951 = vmatprep.subr.bf16.mxu1 %v3242_v3 }
 0x59d   :  { %2953 = vmatpush3.bf16.msra.mxu1 %v3333_v12 }
 0x59e   :  { %2954 = vmatprep.subr.bf16.mxu1 %v3242_v3 }
 0x65b   :  { %v632_v37 = vpop.f32.mrb[4].mxu1 }
 0x65c   :  { %v636_v38 = vadd.f32 %v632_v37, %v163_v36  ;;  %v2674_v39 = vpop.f32.mrb[5].mxu1 }
 0x65e   :  { %3090 = vtanh.f32 %v636_v38  ;;  %v2442_v50 = vmul.f32 -1.442695, %v636_v38 }
 0x668   :  { %v3091_v41 = vpop.eup %3090 }
 0x669   :  { %646 = vrot.lane.b32.xlu0 %v3091_v41, %s3245_s25 }
 0x66b   :  { %v802_v42 = vpop.f32.mrb[6].mxu1 }
 0x66c   :  { %v3033_v43 = vadd.f32 %v3462_v62, %v802_v42  ;;  %v2696_v44 = vpop.f32.mrb[7].mxu1 }
 0x66e   :  { %3092 = vtanh.f32 %v3033_v43  ;;  %v2445_v53 = vmul.f32 -1.442695, %v3033_v43 }
 0x66f   :  { %3094 = vpow2.f32 %v2442_v50 }
 0x670   :  { %3096 = vpow2.f32 %v2445_v53 }
 0x678   :  { %v3093_v49 = vpop.eup %3092 }
 0x679   :  { %816 = vrot.lane.b32.xlu1 %v3093_v49, %s3245_s25  ;;  %v3095_v52 = vpop.eup %3094 }
 0x67a   :  { %v640_v46 = vadd.f32 1.0, %v3095_v52  ;;  %v3097_v54 = vpop.eup %3096 }
 0x67b   :  { %v810_v61 = vadd.f32 1.0, %v3097_v54 }
 0x67c   :  { %3098 = vrcp.f32 %v640_v46 }
 0x67d   :  { %3100 = vrcp.f32 %v810_v61 }
 0x686   :  { %v3099_v58 = vpop.eup %3098 }
 0x687   :  { %v3101_v63 = vpop.eup %3100  ;;  %v644_v2 = vmul.f32 %v3099_v58, %v3470_v23 }
 0x688   :  { %v814_v8 = vmul.f32 %v3101_v63, %v3473_v26 }
 0x6db   :  { %v647_v59 = vpop.permute.xlu0 %646 }
 0x6dc   :  { %v649_v60 = vmul.f32 %v3099_v58, %v647_v59 }
 0x6de   :  { %651 = vrot.lane.b32.xlu0 %v649_v60, %s3246_s3 }
 0x6eb   :  { %v817_v0 = vpop.permute.xlu1 %816 }
 0x6ec   :  { %v819_v1 = vmul.f32 %v3101_v63, %v817_v0 }
 0x6ee   :  { %821 = vrot.lane.b32.xlu1 %v819_v1, %s3246_s3  ;;  %v173_v1 = vadd.f32 %v3350_v13, %v3414_v48 }
 0x750   :  { %v652_v4 = vpop.permute.xlu0 %651 }
 0x751   :  { %v3513_v5 = vadd.f32 %v652_v4, %v644_v2 }
 0x753   :  { %3102 = vtanh.f32 %v3513_v5 }
 0x75d   :  { %v3103_v6 = vpop.eup %3102 }
 0x75e   :  { %657 = vrot.lane.b32.xlu0 %v3103_v6, %s3245_s25 }
 0x760   :  { %v822_v9 = vpop.permute.xlu1 %821 }
 0x761   :  { %v3518_v11 = vadd.f32 %v822_v9, %v814_v8 }
 0x763   :  { %3104 = vtanh.f32 %v3518_v11 }
 0x76d   :  { %v3105_v14 = vpop.eup %3104 }
 0x76e   :  { %827 = vrot.lane.b32.xlu1 %v3105_v14, %s3245_s25 }
 0x7d0   :  { %v658_v15 = vpop.permute.xlu0 %657 }
 0x7d1   :  { %v660_v16 = vmul.f32 %v3099_v58, %v658_v15 }
 0x7d3   :  { %832 = vrot.lane.b32.xlu0 %v660_v16, %s3246_s3 }
 0x7e0   :  { %v828_v17 = vpop.permute.xlu1 %827 }
 0x7e1   :  { %v830_v18 = vmul.f32 %v3101_v63, %v828_v17 }
 0x7e3   :  { %1002 = vrot.lane.b32.xlu1 %v830_v18, %s3246_s3 }
 0x845   :  { %v833_v19 = vpop.permute.xlu0 %832 }
 0x846   :  { %2706 = vmatmul.mubr.msk.f32.vlgmr.msra.gmra.mrb[10].mxu0 %vm191_vm2, %v833_v19 }
 0x847   :  { %2938 = vmatpush3.bf16.msra.mxu0 %v3377_v35  ;;  %2716 = vmatprep.mubr.msk.f32.mxu0 %vm3243_vm1, %v3244_v10 }
 0x848   :  { %2939 = vmatprep.subr.bf16.mxu0 %v3242_v3 }
 0x84b   :  { %2941 = vmatpush3.bf16.msra.mxu0 %v3393_v40 }
 0x84c   :  { %2942 = vmatprep.subr.bf16.mxu0 %v3242_v3 }
 0x84e   :  { %2717 = vmatmul.mubr.msk.f32.vlgmr.msra.gmra.mrb[12].mxu0 %vm191_vm2, %v833_v19 }
 0x84f   :  { %2944 = vmatpush3.bf16.msra.mxu0 %v3422_v51  ;;  %2727 = vmatprep.mubr.msk.f32.mxu0 %vm3243_vm1, %v3244_v10 }
 0x850   :  { %2945 = vmatprep.subr.bf16.mxu0 %v3242_v3 }
 0x853   :  { %2947 = vmatpush3.bf16.msra.mxu0 %v3433_v55 }
 0x854   :  { %2966 = vmatprep.subr.bf16.mxu0 %v3242_v3 }
 0x855   :  { %v1003_v20 = vpop.permute.xlu1 %1002 }
 0x856   :  { %2368 = vst.msk [vmem:[%s3778_s7 + $0x8] sm:$0xff] %vm191_vm2, %v1003_v20  ;;  %2728 = vmatmul.mubr.msk.f32.vlgmr.msra.gmra.mrb[12].mxu0 %vm191_vm2, %v1003_v20 }
 0x857   :  { %2968 = vmatpush3.bf16.msra.mxu0 %v3318_v7  ;;  %2771 = vmatprep.mubr.msk.f32.mxu0 %vm3243_vm1, %v3244_v10 }
 0x858   :  { %2969 = vmatprep.subr.bf16.mxu0 %v3242_v3 }
 0x85b   :  { %2971 = vmatpush3.bf16.msra.mxu0 %v3333_v12 }
 0x85c   :  { %2972 = vmatprep.subr.bf16.mxu0 %v3242_v3 }
 0x919   :  { %v902_v22 = vpop.f32.mrb[10].mxu0 }
 0x91a   :  { %v906_v23 = vadd.f32 %v902_v22, %v168_v21  ;;  %v2707_v24 = vpop.f32.mrb[11].mxu0 }
 0x91c   :  { %3106 = vtanh.f32 %v906_v23  ;;  %v2447_v31 = vmul.f32 -1.442695, %v906_v23 }
 0x926   :  { %v3107_v25 = vpop.eup %3106 }
 0x927   :  { %916 = vrot.lane.b32.xlu0 %v3107_v25, %s3245_s25 }
 0x929   :  { %v1072_v26 = vpop.f32.mrb[12].mxu0 }
 0x92a   :  { %v3034_v27 = vadd.f32 %v3462_v62, %v1072_v26  ;;  %v2729_v28 = vpop.f32.mrb[13].mxu0 }
 0x92c   :  { %3108 = vtanh.f32 %v3034_v27  ;;  %v2450_v32 = vmul.f32 -1.442695, %v3034_v27 }
 0x92d   :  { %3110 = vpow2.f32 %v2447_v31 }
 0x92e   :  { %3112 = vpow2.f32 %v2450_v32 }
 0x936   :  { %v3109_v30 = vpop.eup %3108 }
 0x937   :  { %1086 = vrot.lane.b32.xlu1 %v3109_v30, %s3245_s25  ;;  %v3111_v29 = vpop.eup %3110 }
 0x938   :  { %v910_v45 = vadd.f32 1.0, %v3111_v29  ;;  %v3113_v33 = vpop.eup %3112 }
 0x939   :  { %v1080_v38 = vadd.f32 1.0, %v3113_v33 }
 0x93a   :  { %3114 = vrcp.f32 %v910_v45 }
 0x93b   :  { %3116 = vrcp.f32 %v1080_v38 }
 0x944   :  { %v3115_v34 = vpop.eup %3114 }
 0x945   :  { %v3117_v39 = vpop.eup %3116  ;;  %v914_v43 = vmul.f32 %v3115_v34, %v3513_v5 }
 0x946   :  { %v1084_v52 = vmul.f32 %v3117_v39, %v3518_v11 }
 0x999   :  { %v917_v36 = vpop.permute.xlu0 %916 }
 0x99a   :  { %v919_v37 = vmul.f32 %v3115_v34, %v917_v36 }
 0x99c   :  { %921 = vrot.lane.b32.xlu0 %v919_v37, %s3246_s3 }
 0x9a9   :  { %v1087_v41 = vpop.permute.xlu1 %1086 }
 0x9aa   :  { %v1089_v42 = vmul.f32 %v3117_v39, %v1087_v41  ;;  %v178_v41 = vadd.f32 %v3412_v47, %v3350_v13 }
 0x9ac   :  { %1091 = vrot.lane.b32.xlu1 %v1089_v42, %s3246_s3 }
 0xa0e   :  { %v922_v44 = vpop.permute.xlu0 %921 }
 0xa0f   :  { %v3557_v49 = vadd.f32 %v922_v44, %v914_v43 }
 0xa11   :  { %3118 = vtanh.f32 %v3557_v49 }
 0xa1b   :  { %v3119_v50 = vpop.eup %3118 }
 0xa1c   :  { %927 = vrot.lane.b32.xlu0 %v3119_v50, %s3245_s25 }
 0xa1e   :  { %v1092_v53 = vpop.permute.xlu1 %1091 }
 0xa1f   :  { %v3562_v46 = vadd.f32 %v1092_v53, %v1084_v52 }
 0xa21   :  { %3120 = vtanh.f32 %v3562_v46 }
 0xa2b   :  { %v3121_v54 = vpop.eup %3120 }
 0xa2c   :  { %1097 = vrot.lane.b32.xlu1 %v3121_v54, %s3245_s25 }
 0xa8e   :  { %v928_v58 = vpop.permute.xlu0 %927 }
 0xa8f   :  { %v930_v59 = vmul.f32 %v3115_v34, %v928_v58 }
 0xa91   :  { %1102 = vrot.lane.b32.xlu0 %v930_v59, %s3246_s3 }
 0xa9e   :  { %v1098_v60 = vpop.permute.xlu1 %1097 }
 0xa9f   :  { %v1100_v61 = vmul.f32 %v3117_v39, %v1098_v60 }
 0xaa1   :  { %1272 = vrot.lane.b32.xlu1 %v1100_v61, %s3246_s3 }
 0xb03   :  { %v1103_v63 = vpop.permute.xlu0 %1102 }
 0xb04   :  { %2739 = vmatmul.mubr.msk.f32.vlgmr.msra.gmra.mrb[8].mxu1 %vm191_vm2, %v1103_v63 }
 0xb05   :  { %2956 = vmatpush3.bf16.msra.mxu1 %v3377_v35  ;;  %2749 = vmatprep.mubr.msk.f32.mxu1 %vm3243_vm1, %v3244_v10 }
 0xb06   :  { %2957 = vmatprep.subr.bf16.mxu1 %v3242_v3 }
 0xb09   :  { %2959 = vmatpush3.bf16.msra.mxu1 %v3393_v40 }
 0xb0a   :  { %2960 = vmatprep.subr.bf16.mxu1 %v3242_v3 }
 0xb0c   :  { %2750 = vmatmul.mubr.msk.f32.vlgmr.msra.gmra.mrb[10].mxu1 %vm191_vm2, %v1103_v63 }
 0xb0d   :  { %2962 = vmatpush3.bf16.msra.mxu1 %v3422_v51  ;;  %2760 = vmatprep.mubr.msk.f32.mxu1 %vm3243_vm1, %v3244_v10 }
 0xb0e   :  { %2963 = vmatprep.subr.bf16.mxu1 %v3242_v3 }
 0xb11   :  { %2965 = vmatpush3.bf16.msra.mxu1 %v3433_v55 }
 0xb12   :  { %2984 = vmatprep.subr.bf16.mxu1 %v3242_v3 }
 0xb13   :  { %v1273_v0 = vpop.permute.xlu1 %1272 }
 0xb14   :  { %2369 = vst.msk [vmem:[%s3778_s7 + $0x10] sm:$0xff] %vm191_vm2, %v1273_v0  ;;  %2761 = vmatmul.mubr.msk.f32.vlgmr.msra.gmra.mrb[10].mxu1 %vm191_vm2, %v1273_v0 }
 0xb15   :  { %2986 = vmatpush3.bf16.msra.mxu1 %v3318_v7  ;;  %2804 = vmatprep.mubr.msk.f32.mxu1 %vm3243_vm1, %v3244_v10 }
 0xb16   :  { %2987 = vmatprep.subr.bf16.mxu1 %v3242_v3 }
 0xb19   :  { %2989 = vmatpush3.bf16.msra.mxu1 %v3333_v12 }
 0xb1a   :  { %2990 = vmatprep.subr.bf16.mxu1 %v3242_v3 }
 0xbd7   :  { %v1172_v2 = vpop.f32.mrb[8].mxu1 }
 0xbd8   :  { %v1176_v4 = vadd.f32 %v1172_v2, %v173_v1  ;;  %v2740_v5 = vpop.f32.mrb[9].mxu1 }
 0xbda   :  { %3122 = vtanh.f32 %v1176_v4  ;;  %v2452_v15 = vmul.f32 -1.442695, %v1176_v4 }
 0xbe4   :  { %v3123_v6 = vpop.eup %3122 }
 0xbe5   :  { %1186 = vrot.lane.b32.xlu0 %v3123_v6, %s3245_s25 }
 0xbe7   :  { %v1342_v8 = vpop.f32.mrb[10].mxu1 }
 0xbe8   :  { %v3035_v9 = vadd.f32 %v3462_v62, %v1342_v8  ;;  %v2762_v11 = vpop.f32.mrb[11].mxu1 }
 0xbea   :  { %3124 = vtanh.f32 %v3035_v9  ;;  %v2455_v17 = vmul.f32 -1.442695, %v3035_v9 }
 0xbeb   :  { %3126 = vpow2.f32 %v2452_v15 }
 0xbec   :  { %3128 = vpow2.f32 %v2455_v17 }
 0xbf4   :  { %v3125_v14 = vpop.eup %3124 }
 0xbf5   :  { %1356 = vrot.lane.b32.xlu1 %v3125_v14, %s3245_s25  ;;  %v3127_v16 = vpop.eup %3126 }
 0xbf6   :  { %v1180_v48 = vadd.f32 1.0, %v3127_v16  ;;  %v3129_v18 = vpop.eup %3128 }
 0xbf7   :  { %v1350_v22 = vadd.f32 1.0, %v3129_v18 }
 0xbf8   :  { %3130 = vrcp.f32 %v1180_v48 }
 0xbf9   :  { %3132 = vrcp.f32 %v1350_v22 }
 0xc02   :  { %v3131_v19 = vpop.eup %3130 }
 0xc03   :  { %v3133_v23 = vpop.eup %3132  ;;  %v1184_v26 = vmul.f32 %v3131_v19, %v3557_v49 }
 0xc04   :  { %v1354_v31 = vmul.f32 %v3133_v23, %v3562_v46 }
 0xc57   :  { %v1187_v20 = vpop.permute.xlu0 %1186 }
 0xc58   :  { %v1189_v21 = vmul.f32 %v3131_v19, %v1187_v20 }
 0xc5a   :  { %1191 = vrot.lane.b32.xlu0 %v1189_v21, %s3246_s3  ;;  %v183_v21 = vadd.f32 %v3350_v13, %v3455_v57 }
 0xc67   :  { %v1357_v24 = vpop.permute.xlu1 %1356 }
 0xc68   :  { %v1359_v25 = vmul.f32 %v3133_v23, %v1357_v24 }
 0xc6a   :  { %1361 = vrot.lane.b32.xlu1 %v1359_v25, %s3246_s3 }
 0xccc   :  { %v1192_v27 = vpop.permute.xlu0 %1191 }
 0xccd   :  { %v3601_v28 = vadd.f32 %v1192_v27, %v1184_v26 }
 0xccf   :  { %3134 = vtanh.f32 %v3601_v28 }
 0xcd9   :  { %v3135_v30 = vpop.eup %3134 }
 0xcda   :  { %1197 = vrot.lane.b32.xlu0 %v3135_v30, %s3245_s25 }
 0xcdc   :  { %v1362_v29 = vpop.permute.xlu1 %1361 }
 0xcdd   :  { %v3606_v32 = vadd.f32 %v1362_v29, %v1354_v31 }
 0xcdf   :  { %3136 = vtanh.f32 %v3606_v32 }
 0xce9   :  { %v3137_v45 = vpop.eup %3136 }
 0xcea   :  { %1367 = vrot.lane.b32.xlu1 %v3137_v45, %s3245_s25 }
 0xd4c   :  { %v1198_v33 = vpop.permute.xlu0 %1197 }
 0xd4d   :  { %v1200_v34 = vmul.f32 %v3131_v19, %v1198_v33 }
 0xd4f   :  { %1372 = vrot.lane.b32.xlu0 %v1200_v34, %s3246_s3 }
 0xd5c   :  { %v1368_v36 = vpop.permute.xlu1 %1367 }
 0xd5d   :  { %v1370_v37 = vmul.f32 %v3133_v23, %v1368_v36 }
 0xd5f   :  { %1542 = vrot.lane.b32.xlu1 %v1370_v37, %s3246_s3 }
 0xdc1   :  { %v1373_v38 = vpop.permute.xlu0 %1372 }
 0xdc2   :  { %2772 = vmatmul.mubr.msk.f32.vlgmr.msra.gmra.mrb[14].mxu0 %vm191_vm2, %v1373_v38 }
 0xdc3   :  { %2974 = vmatpush3.bf16.msra.mxu0 %v3377_v35  ;;  %2782 = vmatprep.mubr.msk.f32.mxu0 %vm3243_vm1, %v3244_v10 }
 0xdc4   :  { %2975 = vmatprep.subr.bf16.mxu0 %v3242_v3 }
 0xdc7   :  { %2977 = vmatpush3.bf16.msra.mxu0 %v3393_v40 }
 0xdc8   :  { %2978 = vmatprep.subr.bf16.mxu0 %v3242_v3 }
 0xdca   :  { %2783 = vmatmul.mubr.msk.f32.vlgmr.msra.gmra.mrb[16].mxu0 %vm191_vm2, %v1373_v38 }
 0xdcb   :  { %2980 = vmatpush3.bf16.msra.mxu0 %v3422_v51  ;;  %2793 = vmatprep.mubr.msk.f32.mxu0 %vm3243_vm1, %v3244_v10 }
 0xdcc   :  { %2981 = vmatprep.subr.bf16.mxu0 %v3242_v3 }
 0xdcf   :  { %2983 = vmatpush3.bf16.msra.mxu0 %v3433_v55 }
 0xdd0   :  { %3002 = vmatprep.subr.bf16.mxu0 %v3242_v3 }
 0xdd1   :  { %v1543_v39 = vpop.permute.xlu1 %1542 }
 0xdd2   :  { %2370 = vst.msk [vmem:[%s3778_s7 + $0x18] sm:$0xff] %vm191_vm2, %v1543_v39  ;;  %2794 = vmatmul.mubr.msk.f32.vlgmr.msra.gmra.mrb[16].mxu0 %vm191_vm2, %v1543_v39 }
 0xdd3   :  { %3004 = vmatpush3.bf16.msra.mxu0 %v3318_v7  ;;  %2837 = vmatprep.mubr.msk.f32.mxu0 %vm3243_vm1, %v3244_v10 }
 0xdd4   :  { %3005 = vmatprep.subr.bf16.mxu0 %v3242_v3 }
 0xdd7   :  { %3007 = vmatpush3.bf16.msra.mxu0 %v3333_v12 }
 0xdd8   :  { %3008 = vmatprep.subr.bf16.mxu0 %v3242_v3 }
 0xe95   :  { %v1442_v42 = vpop.f32.mrb[14].mxu0 }
 0xe96   :  { %v1446_v43 = vadd.f32 %v1442_v42, %v178_v41  ;;  %v2773_v44 = vpop.f32.mrb[15].mxu0 }
 0xe98   :  { %3138 = vtanh.f32 %v1446_v43  ;;  %v2457_v12 = vmul.f32 -1.442695, %v1446_v43 }
 0xea2   :  { %v3139_v49 = vpop.eup %3138 }
 0xea3   :  { %1456 = vrot.lane.b32.xlu0 %v3139_v49, %s3245_s25 }
 0xea5   :  { %v1612_v7 = vpop.f32.mrb[16].mxu0 }
 0xea6   :  { %v3036_v50 = vadd.f32 %v3462_v62, %v1612_v7  ;;  %v2795_v52 = vpop.f32.mrb[17].mxu0 }
 0xea8   :  { %3140 = vtanh.f32 %v3036_v50  ;;  %v2460_v54 = vmul.f32 -1.442695, %v3036_v50 }
 0xea9   :  { %3142 = vpow2.f32 %v2457_v12 }
 0xeaa   :  { %3144 = vpow2.f32 %v2460_v54 }
 0xeb2   :  { %v3141_v53 = vpop.eup %3140 }
 0xeb3   :  { %1626 = vrot.lane.b32.xlu1 %v3141_v53, %s3245_s25  ;;  %v3143_v46 = vpop.eup %3142 }
 0xeb4   :  { %v1450_v47 = vadd.f32 1.0, %v3143_v46  ;;  %v3145_v58 = vpop.eup %3144 }
 0xeb5   :  { %v1620_v63 = vadd.f32 1.0, %v3145_v58 }
 0xeb6   :  { %3146 = vrcp.f32 %v1450_v47 }
 0xeb7   :  { %3148 = vrcp.f32 %v1620_v63 }
 0xec0   :  { %v3147_v59 = vpop.eup %3146 }
 0xec1   :  { %v3149_v0 = vpop.eup %3148  ;;  %v1454_v4 = vmul.f32 %v3147_v59, %v3601_v28 }
 0xec2   :  { %v1624_v9 = vmul.f32 %v3149_v0, %v3606_v32 }
 0xf15   :  { %v1457_v60 = vpop.permute.xlu0 %1456 }
 0xf16   :  { %v1459_v61 = vmul.f32 %v3147_v59, %v1457_v60 }
 0xf18   :  { %1461 = vrot.lane.b32.xlu0 %v1459_v61, %s3246_s3 }
 0xf25   :  { %v1627_v1 = vpop.permute.xlu1 %1626 }
 0xf26   :  { %v1629_v2 = vmul.f32 %v3149_v0, %v1627_v1 }
 0xf28   :  { %1631 = vrot.lane.b32.xlu1 %v1629_v2, %s3246_s3 }
 0xf8a   :  { %v1462_v5 = vpop.permute.xlu0 %1461 }
 0xf8b   :  { %v3645_v6 = vadd.f32 %v1462_v5, %v1454_v4 }
 0xf8d   :  { %3150 = vtanh.f32 %v3645_v6 }
 0xf97   :  { %v3151_v8 = vpop.eup %3150 }
 0xf98   :  { %1467 = vrot.lane.b32.xlu0 %v3151_v8, %s3245_s25 }
 0xf9a   :  { %v1632_v11 = vpop.permute.xlu1 %1631 }
 0xf9b   :  { %v3650_v14 = vadd.f32 %v1632_v11, %v1624_v9 }
 0xf9d   :  { %3152 = vtanh.f32 %v3650_v14 }
 0xfa7   :  { %v3153_v15 = vpop.eup %3152 }
 0xfa8   :  { %1637 = vrot.lane.b32.xlu1 %v3153_v15, %s3245_s25 }
0x100a   :  { %v1468_v16 = vpop.permute.xlu0 %1467 }
0x100b   :  { %v1470_v17 = vmul.f32 %v3147_v59, %v1468_v16 }
0x100d   :  { %1642 = vrot.lane.b32.xlu0 %v1470_v17, %s3246_s3 }
0x101a   :  { %v1638_v48 = vpop.permute.xlu1 %1637 }
0x101b   :  { %v1640_v18 = vmul.f32 %v3149_v0, %v1638_v48 }
0x101d   :  { %1812 = vrot.lane.b32.xlu1 %v1640_v18, %s3246_s3 }
0x107f   :  { %v1643_v19 = vpop.permute.xlu0 %1642 }
0x1080   :  { %2805 = vmatmul.mubr.msk.f32.vlgmr.msra.gmra.mrb[12].mxu1 %vm191_vm2, %v1643_v19 }
0x1081   :  { %2992 = vmatpush3.bf16.msra.mxu1 %v3377_v35  ;;  %2815 = vmatprep.mubr.msk.f32.mxu1 %vm3243_vm1, %v3244_v10 }
0x1082   :  { %2993 = vmatprep.subr.bf16.mxu1 %v3242_v3 }
0x1085   :  { %2995 = vmatpush3.bf16.msra.mxu1 %v3393_v40 }
0x1086   :  { %2996 = vmatprep.subr.bf16.mxu1 %v3242_v3 }
0x1088   :  { %2816 = vmatmul.mubr.msk.f32.vlgmr.msra.gmra.mrb[14].mxu1 %vm191_vm2, %v1643_v19 }
0x1089   :  { %2998 = vmatpush3.bf16.msra.mxu1 %v3422_v51  ;;  %2826 = vmatprep.mubr.msk.f32.mxu1 %vm3243_vm1, %v3244_v10 }
0x108a   :  { %2999 = vmatprep.subr.bf16.mxu1 %v3242_v3 }
0x108d   :  { %3001 = vmatpush3.bf16.msra.mxu1 %v3433_v55 }
0x108e   :  { %3020 = vmatprep.subr.bf16.mxu1 %v3242_v3 }
0x108f   :  { %v1813_v20 = vpop.permute.xlu1 %1812 }
0x1090   :  { %2371 = vst.msk [vmem:[%s3778_s7 + $0x20] sm:$0xff] %vm191_vm2, %v1813_v20  ;;  %2827 = vmatmul.mubr.msk.f32.vlgmr.msra.gmra.mrb[14].mxu1 %vm191_vm2, %v1813_v20 }
0x1091   :  { %3022 = vmatpush3.bf16.msra.mxu1 %v3377_v35  ;;  %2870 = vmatprep.mubr.msk.f32.mxu1 %vm3243_vm1, %v3244_v10 }
0x1092   :  { %3023 = vmatprep.subr.bf16.mxu1 %v3242_v3 }
0x1095   :  { %3025 = vmatpush3.bf16.msra.mxu1 %v3393_v40 }
0x1096   :  { %3026 = vmatprep.subr.bf16.mxu1 %v3242_v3 }
0x1153   :  { %v1712_v22 = vpop.f32.mrb[12].mxu1 }
0x1154   :  { %v1716_v23 = vadd.f32 %v1712_v22, %v183_v21  ;;  %v2806_v24 = vpop.f32.mrb[13].mxu1 }
0x1156   :  { %3154 = vtanh.f32 %v1716_v23  ;;  %v2462_v31 = vmul.f32 -1.442695, %v1716_v23 }
0x1160   :  { %v3155_v25 = vpop.eup %3154 }
0x1161   :  { %1726 = vrot.lane.b32.xlu0 %v3155_v25, %s3245_s25 }
0x1163   :  { %v1882_v26 = vpop.f32.mrb[14].mxu1 }
0x1164   :  { %v3037_v27 = vadd.f32 %v3462_v62, %v1882_v26  ;;  %v2828_v28 = vpop.f32.mrb[15].mxu1 }
0x1166   :  { %3156 = vtanh.f32 %v3037_v27  ;;  %v2465_v32 = vmul.f32 -1.442695, %v3037_v27 }
0x1167   :  { %3158 = vpow2.f32 %v2462_v31 }
0x1168   :  { %3160 = vpow2.f32 %v2465_v32 }
0x1170   :  { %v3157_v30 = vpop.eup %3156 }
0x1171   :  { %1896 = vrot.lane.b32.xlu1 %v3157_v30, %s3245_s25  ;;  %v3159_v29 = vpop.eup %3158 }
0x1172   :  { %v1720_v57 = vadd.f32 1.0, %v3159_v29  ;;  %v3161_v45 = vpop.eup %3160 }
0x1173   :  { %v1890_v37 = vadd.f32 1.0, %v3161_v45 }
0x1174   :  { %3162 = vrcp.f32 %v1720_v57 }
0x1175   :  { %3164 = vrcp.f32 %v1890_v37 }
0x117e   :  { %v3163_v33 = vpop.eup %3162 }
0x117f   :  { %v3165_v38 = vpop.eup %3164  ;;  %v1724_v42 = vmul.f32 %v3163_v33, %v3645_v6 }
0x1180   :  { %v1894_v7 = vmul.f32 %v3165_v38, %v3650_v14 }
0x11d3   :  { %v1727_v34 = vpop.permute.xlu0 %1726 }
0x11d4   :  { %v1729_v36 = vmul.f32 %v3163_v33, %v1727_v34 }
0x11d6   :  { %1731 = vrot.lane.b32.xlu0 %v1729_v36, %s3246_s3 }
0x11e3   :  { %v1897_v39 = vpop.permute.xlu1 %1896 }
0x11e4   :  { %v1899_v41 = vmul.f32 %v3165_v38, %v1897_v39 }
0x11e6   :  { %1901 = vrot.lane.b32.xlu1 %v1899_v41, %s3246_s3 }
0x1248   :  { %v1732_v43 = vpop.permute.xlu0 %1731 }
0x1249   :  { %v1734_v44 = vadd.f32 %v1732_v43, %v1724_v42 }
0x124b   :  { %3166 = vtanh.f32 %v1734_v44 }
0x1255   :  { %v3167_v49 = vpop.eup %3166 }
0x1256   :  { %1737 = vrot.lane.b32.xlu0 %v3167_v49, %s3245_s25 }
0x1258   :  { %v1902_v50 = vpop.permute.xlu1 %1901 }
0x1259   :  { %v1904_v52 = vadd.f32 %v1902_v50, %v1894_v7 }
0x125b   :  { %3168 = vtanh.f32 %v1904_v52 }
0x1265   :  { %v3169_v53 = vpop.eup %3168 }
0x1266   :  { %1907 = vrot.lane.b32.xlu1 %v3169_v53, %s3245_s25 }
0x12c8   :  { %v1738_v12 = vpop.permute.xlu0 %1737 }
0x12c9   :  { %v1740_v46 = vmul.f32 %v3163_v33, %v1738_v12 }
0x12cb   :  { %1912 = vrot.lane.b32.xlu0 %v1740_v46, %s3246_s3 }
0x12d8   :  { %v1908_v54 = vpop.permute.xlu1 %1907 }
0x12d9   :  { %v1910_v47 = vmul.f32 %v3165_v38, %v1908_v54 }
0x12db   :  { %2082 = vrot.lane.b32.xlu1 %v1910_v47, %s3246_s3 }
0x133d   :  { %v1913_v58 = vpop.permute.xlu0 %1912 }
0x133e   :  { %2838 = vmatmul.mubr.msk.f32.vlgmr.msra.gmra.mrb[18].mxu0 %vm191_vm2, %v1913_v58 }
0x133f   :  { %3010 = vmatpush3.bf16.msra.mxu0 %v3377_v35  ;;  %2848 = vmatprep.mubr.msk.f32.mxu0 %vm3243_vm1, %v3244_v10 }
0x1340   :  { %3011 = vmatprep.subr.bf16.mxu0 %v3242_v3 }
0x1343   :  { %3013 = vmatpush3.bf16.msra.mxu0 %v3393_v40  ;;  %v188_v40 = vadd.f32 %v3453_v56, %v3350_v13 }
0x1344   :  { %3014 = vmatprep.subr.bf16.mxu0 %v3242_v3 }
0x1346   :  { %2849 = vmatmul.mubr.msk.f32.vlgmr.msra.gmra.mrb[20].mxu0 %vm191_vm2, %v1913_v58 }
0x1347   :  { %3016 = vmatpush3.bf16.msra.mxu0 %v3422_v51  ;;  %2859 = vmatprep.mubr.msk.f32.mxu0 %vm3243_vm1, %v3244_v10 }
0x1348   :  { %3017 = vmatprep.subr.bf16.mxu0 %v3242_v3 }
0x134b   :  { %3019 = vmatpush3.bf16.msra.mxu0 %v3433_v55 }
0x134d   :  { %v2083_v35 = vpop.permute.xlu1 %2082 }
0x134e   :  { %2372 = vst.msk [vmem:[%s3778_s7 + $0x28] sm:$0xff] %vm191_vm2, %v2083_v35  ;;  %2860 = vmatmul.mubr.msk.f32.vlgmr.msra.gmra.mrb[20].mxu0 %vm191_vm2, %v2083_v35 }
0x1411   :  { %v1982_v59 = vpop.f32.mrb[18].mxu0 }
0x1412   :  { %v1986_v60 = vadd.f32 %v1982_v59, %v188_v40  ;;  %v2839_v61 = vpop.f32.mrb[19].mxu0 }
0x1414   :  { %3170 = vtanh.f32 %v1986_v60  ;;  %v2467_v5 = vmul.f32 -1.442695, %v1986_v60 }
0x141e   :  { %v3171_v63 = vpop.eup %3170 }
0x141f   :  { %1996 = vrot.lane.b32.xlu0 %v3171_v63, %s3245_s25 }
0x1421   :  { %v2152_v0 = vpop.f32.mrb[20].mxu0 }
0x1422   :  { %v3038_v1 = vadd.f32 %v3462_v62, %v2152_v0  ;;  %v2861_v2 = vpop.f32.mrb[21].mxu0 }
0x1424   :  { %3172 = vtanh.f32 %v3038_v1  ;;  %v2470_v8 = vmul.f32 -1.442695, %v3038_v1 }
0x1425   :  { %3174 = vpow2.f32 %v2467_v5 }
0x1426   :  { %3176 = vpow2.f32 %v2470_v8 }
0x142e   :  { %v3173_v4 = vpop.eup %3172 }
0x142f   :  { %2166 = vrot.lane.b32.xlu1 %v3173_v4, %s3245_s25  ;;  %v3175_v6 = vpop.eup %3174 }
0x1430   :  { %v1990_v13 = vadd.f32 1.0, %v3175_v6  ;;  %v3177_v56 = vpop.eup %3176 }
0x1431   :  { %v2160_v15 = vadd.f32 1.0, %v3177_v56 }
0x1432   :  { %3178 = vrcp.f32 %v1990_v13 }
0x1433   :  { %3180 = vrcp.f32 %v2160_v15 }
0x143c   :  { %v3179_v9 = vpop.eup %3178 }
0x143d   :  { %v3181_v16 = vpop.eup %3180  ;;  %v1994_v18 = vmul.f32 %v3179_v9, %v1734_v44 }
0x143e   :  { %v2164_v22 = vmul.f32 %v3181_v16, %v1904_v52 }
0x1491   :  { %v1997_v11 = vpop.permute.xlu0 %1996 }
0x1492   :  { %v1999_v14 = vmul.f32 %v3179_v9, %v1997_v11 }
0x1494   :  { %2001 = vrot.lane.b32.xlu0 %v1999_v14, %s3246_s3 }
0x14a1   :  { %v2167_v17 = vpop.permute.xlu1 %2166 }
0x14a2   :  { %v2169_v48 = vmul.f32 %v3181_v16, %v2167_v17 }
0x14a4   :  { %2171 = vrot.lane.b32.xlu1 %v2169_v48, %s3246_s3 }
0x1506   :  { %v2002_v19 = vpop.permute.xlu0 %2001 }
0x1507   :  { %v2004_v20 = vadd.f32 %v2002_v19, %v1994_v18 }
0x1509   :  { %3182 = vtanh.f32 %v2004_v20 }
0x1513   :  { %v3183_v21 = vpop.eup %3182 }
0x1514   :  { %2007 = vrot.lane.b32.xlu0 %v3183_v21, %s3245_s25 }
0x1516   :  { %v2172_v23 = vpop.permute.xlu1 %2171 }
0x1517   :  { %v2174_v24 = vadd.f32 %v2172_v23, %v2164_v22 }
0x1519   :  { %3184 = vtanh.f32 %v2174_v24 }
0x1523   :  { %v3185_v25 = vpop.eup %3184 }
0x1524   :  { %2177 = vrot.lane.b32.xlu1 %v3185_v25, %s3245_s25 }
0x1586   :  { %v2008_v26 = vpop.permute.xlu0 %2007 }
0x1587   :  { %v2010_v27 = vmul.f32 %v3179_v9, %v2008_v26 }
0x1589   :  { %2182 = vrot.lane.b32.xlu0 %v2010_v27, %s3246_s3 }
0x1596   :  { %v2178_v28 = vpop.permute.xlu1 %2177 }
0x1597   :  { %v2180_v30 = vmul.f32 %v3181_v16, %v2178_v28 }
0x1599   :  { %2257 = vrot.lane.b32.xlu1 %v2180_v30, %s3246_s3 }
0x15fb   :  { %v2183_v31 = vpop.permute.xlu0 %2182 }
0x15fc   :  { %2376 = vst.msk [vmem:[#allocation2] sm:$0xff] %vm191_vm2, %v2183_v31  ;;  %2871 = vmatmul.mubr.msk.f32.vlgmr.msra.gmra.mrb[16].mxu1 %vm191_vm2, %v2183_v31 }
0x15fd   :  { %3028 = vmatpush3.bf16.msra.mxu1 %v3422_v51  ;;  %2881 = vmatprep.mubr.msk.f32.mxu1 %vm3243_vm1, %v3244_v10 }
0x15fe   :  { %3029 = vmatprep.subr.bf16.mxu1 %v3242_v3 }
0x1601   :  { %3031 = vmatpush3.bf16.msra.mxu1 %v3433_v55 }
0x160b   :  { %v2258_v29 = vpop.permute.xlu1 %2257 }
0x160c   :  { %2373 = vst.msk [vmem:[%s3778_s7 + $0x30] sm:$0xff] %vm191_vm2, %v2258_v29  ;;  %2882 = vmatmul.mubr.msk.f32.vlgmr.msra.gmra.mrb[16].mxu1 %vm191_vm2, %v2258_v29 }
0x16df   :  { %v2327_v32 = vpop.f32.mrb[16].mxu1 }
0x16e0   :  { %v3039_v57 = vadd.f32 %v3462_v62, %v2327_v32  ;;  %v2883_v45 = vpop.f32.mrb[17].mxu1 }
0x16e2   :  { %3186 = vtanh.f32 %v3039_v57  ;;  %v2473_v10 = vmul.f32 -1.442695, %v3039_v57 }
0x16e4   :  { %3188 = vpow2.f32 %v2473_v10 }
0x16ec   :  { %v3187_v51 = vpop.eup %3186 }
0x16ed   :  { %2341 = vrot.lane.b32.xlu0 %v3187_v51, %s3245_s25 }
0x16ee   :  { %v3189_v3 = vpop.eup %3188 }
0x16ef   :  { %v2335_v55 = vadd.f32 1.0, %v3189_v3 }
0x16f1   :  { %3190 = vrcp.f32 %v2335_v55 }
0x16fb   :  { %v3191_v33 = vpop.eup %3190 }
0x16fc   :  { %v2339_v37 = vmul.f32 %v3191_v33, %v2174_v24 }
0x175f   :  { %v2342_v34 = vpop.permute.xlu0 %2341 }
0x1760   :  { %v2344_v36 = vmul.f32 %v3191_v33, %v2342_v34 }
0x1762   :  { %2346 = vrot.lane.b32.xlu1 %v2344_v36, %s3246_s3 }
0x17d4   :  { %v2347_v38 = vpop.permute.xlu1 %2346 }
0x17d5   :  { %v2349_v39 = vadd.f32 %v2347_v38, %v2339_v37 }
0x17d7   :  { %3192 = vtanh.f32 %v2349_v39 }
0x17e1   :  { %v3193_v62 = vpop.eup %3192 }
0x17e2   :  { %2352 = vrot.lane.b32.xlu0 %v3193_v62, %s3245_s25  ;;  %s3194_s25 = scalar_lea.vmem %s2398_s0, 256 }
0x17e3   :  { %p3195_p0 = scmp.ne.s32.totalorder %s2398_s0, %s3194_s25  ;;  %p3200_p2 = scmp.lt.s32.totalorder %s3194_s25, %s3194_s25 }
0x17e5   :  { %p3201_p3 = por %p3200_p2, %p3199_p1 }
0x17e6   :  { %2378 = vrot.lane.b32.xlu0 %v2004_v20, %s3247_s22 }
0x17e7   :  { %p3202_p4 = pnand %p3201_p3, %p3195_p0 }
0x1854   :  { %v2353_v41 = vpop.permute.xlu0 %2352 }
0x1855   :  { %v2355_v42 = vmul.f32 %v3191_v33, %v2353_v41 }
0x1857   :  { %2357 = vrot.lane.b32.xlu1 %v2355_v42, %s3246_s3 }
0x1858   :  { %v2379_v43 = vpop.permute.xlu0 %2378 }
0x1859   :  { %2381 = vst.msk [vmem:[#allocation4] sm:$0xff] %vm191_vm2, %v2379_v43 }
0x185b   :  { %2385 = vrot.lane.b32.xlu1 %v2349_v39, %s3247_s22 }
0x18c9   :  { %v2358_v44 = vpop.permute.xlu1 %2357 }
0x18ca   :  { %2374 = vst.msk [vmem:[%s3778_s7 + $0x38] sm:$0xff] %vm191_vm2, %v2358_v44  ;;  %2383 = vst.msk [vmem:[#allocation2 + $0x8] sm:$0xff] %vm191_vm2, %v2358_v44 }
0x18cb   :  { %3205 = shalt.err (!%p3202_p4)
}
0x18cc   :  { %s3206_s28 = scalar_lea.hbm %s3779_s8, 256 }
0x18cd   :  { %p3207_p5 = scmp.ne.s32.totalorder %s3779_s8, %s3206_s28  ;;  %p3210_p6 = scmp.lt.u32.totalorder %s3206_s28, %s3779_s8 }
0x18cf   :  { %p3212_p7 = pnand %p3210_p6, %p3207_p5 }
0x18d1   :  { %3215 = shalt.err (!%p3212_p7)
}
0x18d2   :  { %s3250_s7 = smov 128   ;;  %s3251_s10 = smov 8   ;;  %v2386_v49 = vpop.permute.xlu1 %2385 }
0x18d3   :  { %2403 = dma.vmem_to_hbm [thread:$0]  %s2398_s0, 256, %s3779_s8, [#allocation3], %s3250_s7, %s3250_s7, %s3251_s10   ;;  %2389 = vst.msk [vmem:[#allocation4 + $0x8] sm:$0xff] %vm191_vm2, %v2386_v49 }
0x18d4   :  { %s3216_s13 = scalar_lea.vmem %s2410_s2, 256  ;;  %p3221_p9 = scmp.lt.s32.totalorder %s2410_s2, %s2410_s2 }
0x18d5   :  { %p3217_p8 = scmp.ne.s32.totalorder %s2410_s2, %s3216_s13  ;;  %p3222_p10 = scmp.lt.s32.totalorder %s3216_s13, %s3216_s13 }
0x18d7   :  { %p3223_p11 = por %p3222_p10, %p3221_p9 }
0x18d9   :  { %p3224_p12 = pnand %p3223_p11, %p3217_p8 }
0x18db   :  { %3227 = shalt.err (!%p3224_p12)
}
0x18dc   :  { %s3228_s16 = scalar_lea.hbm %s3780_s9, 256 }
0x18dd   :  { %p3229_p13 = scmp.ne.s32.totalorder %s3780_s9, %s3228_s16  ;;  %p3232_p0 = scmp.lt.u32.totalorder %s3228_s16, %s3780_s9 }
0x18df   :  { %p3234_p1 = pnand %p3232_p0, %p3229_p13 }
0x18e1   :  { %3237 = shalt.err (!%p3234_p1)
}
0x18e2   :  { %2415 = dma.vmem_to_hbm [thread:$0]  %s2410_s2, 256, %s3780_s9, [#allocation5], %s3250_s7, %s3250_s7, %s3251_s10  }
0x18e3   :  { %3238 = dma.done.wait [#allocation3], 256  }
0x18e4   :  { %3239 = vsyncadd [#allocation3], 4294967040 }
0x18e5   :  { %3240 = dma.done.wait [#allocation5], 256  }
0x18e6   :  { %3241 = vsyncadd [#allocation5], 4294967040 }
0x18e7   :  { %2424 = vsyncpa [#allocation3], 1 }
0x18e8   :  { %2425 = vsyncpa [#allocation5], 1 }

</bundles_post_ra>
